<compile_context>
chip_gen: v7x
topology: tpu7x:2x2x1
jax: 0.10.0
libtpu: 0.0.40
codegen_flags: <defaults>
</compile_context>

<pallas_src>
import jax
import jax.numpy as jnp
from jax.experimental import pallas as pl
from jax.experimental.pallas import tpu as pltpu

BN_EPS = 1e-5


# ----------------------------------------------------------------------------
# Wrapper-side folding: conv weight + eval-mode BN -> transposed matmul operand
# ----------------------------------------------------------------------------
def _fold_conv_bn(w_oihw, gamma, beta, mean, var):
    """Fold BN scale into the conv weight, transposed for (Cout, M) outputs.

    Returns:
      wt   : (Cout, kh*kw*Cin) with column order (dy, dx, ci), scale folded in.
      bias : (Cout, 1)
    """
    scale = gamma / jnp.sqrt(var + BN_EPS)                    # (Cout,)
    bias = (beta - mean * scale)[:, None]                     # (Cout, 1)
    cout, cin, kh, kw = w_oihw.shape
    wt = jnp.transpose(w_oihw, (0, 2, 3, 1)).reshape(cout, kh * kw * cin)
    return wt * scale[:, None], bias


# ----------------------------------------------------------------------------
# Fused BasicBlock kernel (one grid step = one image)
# ----------------------------------------------------------------------------
def _make_block_kernel(stride, cin, cout, ho, wo, has_proj):
    s = stride
    m = ho * wo

    def kernel(*refs):
        if has_proj:
            (xph_ref, w1_ref, b1_ref, w2_ref, b2_ref, ws_ref, bs_ref,
             o_ref, h1p_ref) = refs
        else:
            xph_ref, w1_ref, b1_ref, w2_ref, b2_ref, o_ref, h1p_ref = refs

        # In-VMEM "im2col": each 3x3 tap at stride s is a *contiguous* slice of
        # one phase plane of the phase-split padded input block.
        def conv1_tap(dy, dx):
            p = (dy % s) * s + (dx % s)          # phase plane
            oy, ox = dy // s, dx // s            # offset inside the phase
            patch = xph_ref[0, p * cin:(p + 1) * cin, oy:oy + ho, ox:ox + wo]
            return patch.reshape(cin, m)         # (Cin, M), M on the lane axis

        # ---- conv1 (3x3, stride s) + bn1 (scale pre-folded) + relu ----------
        a1 = jnp.concatenate([conv1_tap(dy, dx)
                              for dy in range(3) for dx in range(3)], axis=0)
        h1 = jnp.dot(w1_ref[...], a1, preferred_element_type=jnp.float32)
        h1 = jnp.maximum(h1 + b1_ref[...], 0.0)                  # (Cout, M)

        # Stage conv1 output into a zero-padded spatial scratch so conv2 taps
        # are again contiguous slices (stride 1, pad 1).
        h1p_ref[...] = jnp.zeros_like(h1p_ref)
        h1p_ref[:, 1:ho + 1, 1:wo + 1] = h1.reshape(cout, ho, wo)

        # ---- conv2 (3x3, stride 1) + bn2 ------------------------------------
        a2 = jnp.concatenate(
            [h1p_ref[:, dy:dy + ho, dx:dx + wo].reshape(cout, m)
             for dy in range(3) for dx in range(3)], axis=0)
        out = jnp.dot(w2_ref[...], a2, preferred_element_type=jnp.float32)
        out = out + b2_ref[...]

        # ---- shortcut + residual add + relu ---------------------------------
        # The 1x1 stride-s conv input is exactly the (dy, dx) = (1, 1) tap.
        if has_proj:
            sc = jnp.dot(ws_ref[...], conv1_tap(1, 1),
                         preferred_element_type=jnp.float32) + bs_ref[...]
        else:
            sc = conv1_tap(1, 1)                                  # identity

        o_ref[0] = jnp.maximum(out + sc, 0.0).astype(o_ref.dtype)

    return kernel


def basic_block_forward(x_nchw, params, stride):
    """Pallas TPU implementation of BasicBlock.forward (eval-mode BN).

    Input and output are NCHW float32, matching the PyTorch module.
    """
    N, Cin, H, W = x_nchw.shape
    Cout = params["w1"].shape[0]
    s = int(stride)
    Ho = (H - 1) // s + 1
    Wo = (W - 1) // s + 1
    M = Ho * Wo
    has_proj = s != 1

    # Fold BN into transposed per-tap weights (tiny, done once per call).
    w1t, b1 = _fold_conv_bn(params["w1"], *params["bn1"])     # (Cout, 9*Cin)
    w2t, b2 = _fold_conv_bn(params["w2"], *params["bn2"])     # (Cout, 9*Cout)

    # Pad by 1 (conv halo) and phase-split by the stride (space-to-depth) so
    # every 3x3 tap becomes a contiguous slice inside the kernel.  This is the
    # only wrapper-side data movement (~1x the input bytes, not 9x im2col).
    xpad = jnp.pad(x_nchw, ((0, 0), (0, 0), (1, 1), (1, 1)))
    Hp, Wp = H + 2, W + 2
    Hq, Wq = -(-Hp // s), -(-Wp // s)
    xpad = jnp.pad(xpad, ((0, 0), (0, 0), (0, Hq * s - Hp), (0, Wq * s - Wp)))
    xph = xpad.reshape(N, Cin, Hq, s, Wq, s)
    xph = jnp.transpose(xph, (0, 3, 5, 1, 2, 4)).reshape(N, s * s * Cin, Hq, Wq)

    kernel = _make_block_kernel(s, Cin, Cout, Ho, Wo, has_proj)

    const2 = lambda n: (0, 0)
    in_specs = [
        pl.BlockSpec((1, s * s * Cin, Hq, Wq), lambda n: (n, 0, 0, 0)),
        pl.BlockSpec((Cout, 9 * Cin), const2),     # conv1 weight (BN folded)
        pl.BlockSpec((Cout, 1), const2),           # conv1 bias
        pl.BlockSpec((Cout, 9 * Cout), const2),    # conv2 weight (BN folded)
        pl.BlockSpec((Cout, 1), const2),           # conv2 bias
    ]
    args = [xph, w1t, b1, w2t, b2]
    if has_proj:
        wst, bs = _fold_conv_bn(params["ws"], *params["bns"])  # (Cout, Cin)
        in_specs += [pl.BlockSpec((Cout, Cin), const2),
                     pl.BlockSpec((Cout, 1), const2)]
        args += [wst, bs]

    out_flat = pl.pallas_call(
        kernel,
        out_shape=jax.ShapeDtypeStruct((N, Cout, M), x_nchw.dtype),
        grid=(N,),                                  # >= 2 steps -> v7x dual TC
        in_specs=in_specs,
        out_specs=pl.BlockSpec((1, Cout, M), lambda n: (n, 0, 0)),
        scratch_shapes=[pltpu.VMEM((Cout, Ho + 2, Wo + 2), jnp.float32)],
        compiler_params=pltpu.CompilerParams(
            dimension_semantics=("parallel",)),
    )(*args)

    # (N, Cout, Ho*Wo) -> NCHW: row-major reshape, no data movement.
    return out_flat.reshape(N, Cout, Ho, Wo)


# ----------------------------------------------------------------------------
# Reference (pure JAX / XLA) for the correctness check
# ----------------------------------------------------------------------------
def reference_block(x_nchw, p, stride):
    dn = ("NCHW", "OIHW", "NCHW")

    def conv(x, w, s, pad):
        return jax.lax.conv_general_dilated(
            x, w, (s, s), [(pad, pad), (pad, pad)], dimension_numbers=dn,
            precision=jax.lax.Precision.HIGHEST)

    def bn(x, stats):
        gamma, beta, mean, var = stats
        sc = gamma / jnp.sqrt(var + BN_EPS)
        return x * sc[None, :, None, None] + (beta - mean * sc)[None, :, None, None]

    out = jax.nn.relu(bn(conv(x_nchw, p["w1"], stride, 1), p["bn1"]))
    out = bn(conv(out, p["w2"], 1, 1), p["bn2"])
    sc = bn(conv(x_nchw, p["ws"], stride, 0), p["bns"]) if stride != 1 else x_nchw
    return jax.nn.relu(out + sc)


# ----------------------------------------------------------------------------
# Deterministic parameter init (shapes from BasicBlock.__init__)
# ----------------------------------------------------------------------------
def init_params(key, in_planes, out_planes, stride):
    ks = jax.random.split(key, 12)

    def bn_stats(k0, k1, k2, k3, c):
        gamma = jax.random.uniform(k0, (c,), jnp.float32, 0.5, 1.5)
        beta = jax.random.normal(k1, (c,), jnp.float32) * 0.1
        mean = jax.random.normal(k2, (c,), jnp.float32) * 0.1
        var = jax.random.uniform(k3, (c,), jnp.float32, 0.5, 1.5)
        return (gamma, beta, mean, var)

    p = {
        "w1": jax.random.normal(ks[0], (out_planes, in_planes, 3, 3), jnp.float32) * 0.1,
        "bn1": bn_stats(ks[1], ks[2], ks[3], ks[4], out_planes),
        "w2": jax.random.normal(ks[5], (out_planes, out_planes, 3, 3), jnp.float32) * 0.1,
        "bn2": bn_stats(ks[6], ks[7], ks[8], ks[9], out_planes),
    }
    if stride != 1:
        p["ws"] = jax.random.normal(ks[10], (out_planes, in_planes, 1, 1), jnp.float32) * 0.1
        p["bns"] = bn_stats(*jax.random.split(ks[11], 4), out_planes)
    return p


# ----------------------------------------------------------------------------
if __name__ == "__main__":
    key = jax.random.PRNGKey(0)
    k_x1, k_x2, k_p1, k_p2 = jax.random.split(key, 4)

    fwd = jax.jit(basic_block_forward, static_argnames=("stride",))

    # Config A: stride=2 downsampling block (exercises the conv-shortcut path).
    xA = jax.random.normal(k_x1, (2, 4, 16, 16), jnp.float32)      # NCHW
    pA = init_params(k_p1, in_planes=4, out_planes=8, stride=2)
    outA = jax.block_until_ready(fwd(xA, pA, stride=2))
    refA = reference_block(xA, pA, stride=2)
    assert outA.shape == (2, 8, 8, 8)
    assert jnp.allclose(outA, refA, atol=1e-3, rtol=1e-3), "mismatch (stride=2)"

    # Config B: stride=1 identity-shortcut block (in_planes == out_planes).
    xB = jax.random.normal(k_x2, (2, 8, 16, 16), jnp.float32)      # NCHW
    pB = init_params(k_p2, in_planes=8, out_planes=8, stride=1)
    outB = jax.block_until_ready(fwd(xB, pB, stride=1))
    refB = reference_block(xB, pB, stride=1)
    assert outB.shape == (2, 8, 16, 16)
    assert jnp.allclose(outB, refB, atol=1e-3, rtol=1e-3), "mismatch (stride=1)"

    print("KERNEL_OK")
</pallas_src>

<mosaic_0001>
module attributes {stable_mosaic.version = 11 : i64} {
  func.func @kernel(%arg0: i32, %arg1: memref<1x16x9x9xf32, #tpu.memory_space<vmem>>, %arg2: memref<8x36xf32, #tpu.memory_space<vmem>>, %arg3: memref<8x1xf32, #tpu.memory_space<vmem>>, %arg4: memref<8x72xf32, #tpu.memory_space<vmem>>, %arg5: memref<8x1xf32, #tpu.memory_space<vmem>>, %arg6: memref<8x4xf32, #tpu.memory_space<vmem>>, %arg7: memref<8x1xf32, #tpu.memory_space<vmem>>, %arg8: memref<1x8x64xf32, #tpu.memory_space<vmem>>, %arg9: memref<8x10x10xf32, #tpu.memory_space<vmem>>) attributes {dimension_semantics = [#tpu.dimension_semantics<parallel>], iteration_bounds = array<i64: 2>, scalar_prefetch = 0 : i64, scratch_operands = 1 : i64, tpu.core_type = #tpu.core_type<tc>, window_params = [{transform_indices = @transform_0, window_bounds = array<i64: 1, 16, 9, 9>}, {pipeline_mode = #tpu.pipeline_mode<synchronous>, transform_indices = @transform_1, window_bounds = array<i64: 8, 36>}, {pipeline_mode = #tpu.pipeline_mode<synchronous>, transform_indices = @transform_2, window_bounds = array<i64: 8, 1>}, {pipeline_mode = #tpu.pipeline_mode<synchronous>, transform_indices = @transform_3, window_bounds = array<i64: 8, 72>}, {pipeline_mode = #tpu.pipeline_mode<synchronous>, transform_indices = @transform_4, window_bounds = array<i64: 8, 1>}, {pipeline_mode = #tpu.pipeline_mode<synchronous>, transform_indices = @transform_5, window_bounds = array<i64: 8, 4>}, {pipeline_mode = #tpu.pipeline_mode<synchronous>, transform_indices = @transform_6, window_bounds = array<i64: 8, 1>}, {transform_indices = @transform_7, window_bounds = array<i64: 1, 8, 64>}]} {
    %c0 = arith.constant 0 : index
    %c0_0 = arith.constant 0 : index
    %c0_1 = arith.constant 0 : index
    %c0_2 = arith.constant 0 : index
    %0 = vector.load %arg1[%c0, %c0_0, %c0_1, %c0_2] : memref<1x16x9x9xf32, #tpu.memory_space<vmem>>, vector<1x4x8x8xf32>
    %1 = vector.shape_cast %0 : vector<1x4x8x8xf32> to vector<4x8x8xf32>
    %2 = vector.shape_cast %1 : vector<4x8x8xf32> to vector<4x64xf32>
    %c0_3 = arith.constant 0 : index
    %c4 = arith.constant 4 : index
    %c0_4 = arith.constant 0 : index
    %c0_5 = arith.constant 0 : index
    %3 = vector.load %arg1[%c0_3, %c4, %c0_4, %c0_5] : memref<1x16x9x9xf32, #tpu.memory_space<vmem>>, vector<1x4x8x8xf32>
    %4 = vector.shape_cast %3 : vector<1x4x8x8xf32> to vector<4x8x8xf32>
    %5 = vector.shape_cast %4 : vector<4x8x8xf32> to vector<4x64xf32>
    %c0_6 = arith.constant 0 : index
    %c0_7 = arith.constant 0 : index
    %c0_8 = arith.constant 0 : index
    %c1 = arith.constant 1 : index
    %6 = vector.load %arg1[%c0_6, %c0_7, %c0_8, %c1] : memref<1x16x9x9xf32, #tpu.memory_space<vmem>>, vector<1x4x8x8xf32>
    %7 = vector.shape_cast %6 : vector<1x4x8x8xf32> to vector<4x8x8xf32>
    %8 = vector.shape_cast %7 : vector<4x8x8xf32> to vector<4x64xf32>
    %c0_9 = arith.constant 0 : index
    %c8 = arith.constant 8 : index
    %c0_10 = arith.constant 0 : index
    %c0_11 = arith.constant 0 : index
    %9 = vector.load %arg1[%c0_9, %c8, %c0_10, %c0_11] : memref<1x16x9x9xf32, #tpu.memory_space<vmem>>, vector<1x4x8x8xf32>
    %10 = vector.shape_cast %9 : vector<1x4x8x8xf32> to vector<4x8x8xf32>
    %11 = vector.shape_cast %10 : vector<4x8x8xf32> to vector<4x64xf32>
    %c0_12 = arith.constant 0 : index
    %c12 = arith.constant 12 : index
    %c0_13 = arith.constant 0 : index
    %c0_14 = arith.constant 0 : index
    %12 = vector.load %arg1[%c0_12, %c12, %c0_13, %c0_14] : memref<1x16x9x9xf32, #tpu.memory_space<vmem>>, vector<1x4x8x8xf32>
    %13 = vector.shape_cast %12 : vector<1x4x8x8xf32> to vector<4x8x8xf32>
    %14 = vector.shape_cast %13 : vector<4x8x8xf32> to vector<4x64xf32>
    %c0_15 = arith.constant 0 : index
    %c8_16 = arith.constant 8 : index
    %c0_17 = arith.constant 0 : index
    %c1_18 = arith.constant 1 : index
    %15 = vector.load %arg1[%c0_15, %c8_16, %c0_17, %c1_18] : memref<1x16x9x9xf32, #tpu.memory_space<vmem>>, vector<1x4x8x8xf32>
    %16 = vector.shape_cast %15 : vector<1x4x8x8xf32> to vector<4x8x8xf32>
    %17 = vector.shape_cast %16 : vector<4x8x8xf32> to vector<4x64xf32>
    %c0_19 = arith.constant 0 : index
    %c0_20 = arith.constant 0 : index
    %c1_21 = arith.constant 1 : index
    %c0_22 = arith.constant 0 : index
    %18 = vector.load %arg1[%c0_19, %c0_20, %c1_21, %c0_22] : memref<1x16x9x9xf32, #tpu.memory_space<vmem>>, vector<1x4x8x8xf32>
    %19 = vector.shape_cast %18 : vector<1x4x8x8xf32> to vector<4x8x8xf32>
    %20 = vector.shape_cast %19 : vector<4x8x8xf32> to vector<4x64xf32>
    %c0_23 = arith.constant 0 : index
    %c4_24 = arith.constant 4 : index
    %c1_25 = arith.constant 1 : index
    %c0_26 = arith.constant 0 : index
    %21 = vector.load %arg1[%c0_23, %c4_24, %c1_25, %c0_26] : memref<1x16x9x9xf32, #tpu.memory_space<vmem>>, vector<1x4x8x8xf32>
    %22 = vector.shape_cast %21 : vector<1x4x8x8xf32> to vector<4x8x8xf32>
    %23 = vector.shape_cast %22 : vector<4x8x8xf32> to vector<4x64xf32>
    %c0_27 = arith.constant 0 : index
    %c0_28 = arith.constant 0 : index
    %c1_29 = arith.constant 1 : index
    %c1_30 = arith.constant 1 : index
    %24 = vector.load %arg1[%c0_27, %c0_28, %c1_29, %c1_30] : memref<1x16x9x9xf32, #tpu.memory_space<vmem>>, vector<1x4x8x8xf32>
    %25 = vector.shape_cast %24 : vector<1x4x8x8xf32> to vector<4x8x8xf32>
    %26 = vector.shape_cast %25 : vector<4x8x8xf32> to vector<4x64xf32>
    %27 = tpu.concatenate %2, %5, %8, %11, %14, %17, %20, %23, %26 in 0 : vector<4x64xf32>, vector<4x64xf32>, vector<4x64xf32>, vector<4x64xf32>, vector<4x64xf32>, vector<4x64xf32>, vector<4x64xf32>, vector<4x64xf32>, vector<4x64xf32> -> vector<36x64xf32>
    %c0_31 = arith.constant 0 : index
    %c0_32 = arith.constant 0 : index
    %28 = vector.load %arg2[%c0_31, %c0_32] : memref<8x36xf32, #tpu.memory_space<vmem>>, vector<8x36xf32>
    %cst = arith.constant dense<0.000000e+00> : vector<8x64xf32>
    %29 = tpu.matmul %28, %27, %cst {dimension_numbers = #tpu.dot_dimension_numbers<[1], [0], [0], [1], [0, 0, 1, 1], [], []>} : vector<8x36xf32>, vector<36x64xf32>, vector<8x64xf32> -> vector<8x64xf32>
    %c0_33 = arith.constant 0 : index
    %c0_34 = arith.constant 0 : index
    %30 = vector.load %arg3[%c0_33, %c0_34] : memref<8x1xf32, #tpu.memory_space<vmem>>, vector<8x1xf32>
    %31 = vector.broadcast %30 : vector<8x1xf32> to vector<8x64xf32>
    %32 = arith.addf %29, %31 : vector<8x64xf32>
    %cst_35 = arith.constant 0.000000e+00 : f32
    %33 = vector.broadcast %cst_35 : f32 to vector<8x64xf32>
    %34 = arith.maximumf %32, %33 : vector<8x64xf32>
    %cst_36 = arith.constant 0.000000e+00 : f32
    %35 = vector.broadcast %cst_36 : f32 to vector<8x10x10xf32>
    %c0_37 = arith.constant 0 : index
    %c0_38 = arith.constant 0 : index
    %c0_39 = arith.constant 0 : index
    %36 = vector.load %arg9[%c0_37, %c0_38, %c0_39] : memref<8x10x10xf32, #tpu.memory_space<vmem>>, vector<8x10x10xf32>
    tpu.vector_store %arg9[%c0_37, %c0_38, %c0_39], %35 {strides = array<i32>} : memref<8x10x10xf32, #tpu.memory_space<vmem>>, vector<8x10x10xf32>,
    %37 = vector.shape_cast %34 : vector<8x64xf32> to vector<8x8x8xf32>
    %c0_40 = arith.constant 0 : index
    %c1_41 = arith.constant 1 : index
    %c1_42 = arith.constant 1 : index
    %38 = vector.load %arg9[%c0_40, %c1_41, %c1_42] : memref<8x10x10xf32, #tpu.memory_space<vmem>>, vector<8x8x8xf32>
    tpu.vector_store %arg9[%c0_40, %c1_41, %c1_42], %37 {strides = array<i32>} : memref<8x10x10xf32, #tpu.memory_space<vmem>>, vector<8x8x8xf32>,
    %c0_43 = arith.constant 0 : index
    %c0_44 = arith.constant 0 : index
    %c0_45 = arith.constant 0 : index
    %39 = vector.load %arg9[%c0_43, %c0_44, %c0_45] : memref<8x10x10xf32, #tpu.memory_space<vmem>>, vector<8x8x8xf32>
    %40 = vector.shape_cast %39 : vector<8x8x8xf32> to vector<8x64xf32>
    %c0_46 = arith.constant 0 : index
    %c0_47 = arith.constant 0 : index
    %c1_48 = arith.constant 1 : index
    %41 = vector.load %arg9[%c0_46, %c0_47, %c1_48] : memref<8x10x10xf32, #tpu.memory_space<vmem>>, vector<8x8x8xf32>
    %42 = vector.shape_cast %41 : vector<8x8x8xf32> to vector<8x64xf32>
    %c0_49 = arith.constant 0 : index
    %c0_50 = arith.constant 0 : index
    %c2 = arith.constant 2 : index
    %43 = vector.load %arg9[%c0_49, %c0_50, %c2] : memref<8x10x10xf32, #tpu.memory_space<vmem>>, vector<8x8x8xf32>
    %44 = vector.shape_cast %43 : vector<8x8x8xf32> to vector<8x64xf32>
    %c0_51 = arith.constant 0 : index
    %c1_52 = arith.constant 1 : index
    %c0_53 = arith.constant 0 : index
    %45 = vector.load %arg9[%c0_51, %c1_52, %c0_53] : memref<8x10x10xf32, #tpu.memory_space<vmem>>, vector<8x8x8xf32>
    %46 = vector.shape_cast %45 : vector<8x8x8xf32> to vector<8x64xf32>
    %c0_54 = arith.constant 0 : index
    %c1_55 = arith.constant 1 : index
    %c1_56 = arith.constant 1 : index
    %47 = vector.load %arg9[%c0_54, %c1_55, %c1_56] : memref<8x10x10xf32, #tpu.memory_space<vmem>>, vector<8x8x8xf32>
    %48 = vector.shape_cast %47 : vector<8x8x8xf32> to vector<8x64xf32>
    %c0_57 = arith.constant 0 : index
    %c1_58 = arith.constant 1 : index
    %c2_59 = arith.constant 2 : index
    %49 = vector.load %arg9[%c0_57, %c1_58, %c2_59] : memref<8x10x10xf32, #tpu.memory_space<vmem>>, vector<8x8x8xf32>
    %50 = vector.shape_cast %49 : vector<8x8x8xf32> to vector<8x64xf32>
    %c0_60 = arith.constant 0 : index
    %c2_61 = arith.constant 2 : index
    %c0_62 = arith.constant 0 : index
    %51 = vector.load %arg9[%c0_60, %c2_61, %c0_62] : memref<8x10x10xf32, #tpu.memory_space<vmem>>, vector<8x8x8xf32>
    %52 = vector.shape_cast %51 : vector<8x8x8xf32> to vector<8x64xf32>
    %c0_63 = arith.constant 0 : index
    %c2_64 = arith.constant 2 : index
    %c1_65 = arith.constant 1 : index
    %53 = vector.load %arg9[%c0_63, %c2_64, %c1_65] : memref<8x10x10xf32, #tpu.memory_space<vmem>>, vector<8x8x8xf32>
    %54 = vector.shape_cast %53 : vector<8x8x8xf32> to vector<8x64xf32>
    %c0_66 = arith.constant 0 : index
    %c2_67 = arith.constant 2 : index
    %c2_68 = arith.constant 2 : index
    %55 = vector.load %arg9[%c0_66, %c2_67, %c2_68] : memref<8x10x10xf32, #tpu.memory_space<vmem>>, vector<8x8x8xf32>
    %56 = vector.shape_cast %55 : vector<8x8x8xf32> to vector<8x64xf32>
    %57 = tpu.concatenate %40, %42, %44, %46, %48, %50, %52, %54, %56 in 0 : vector<8x64xf32>, vector<8x64xf32>, vector<8x64xf32>, vector<8x64xf32>, vector<8x64xf32>, vector<8x64xf32>, vector<8x64xf32>, vector<8x64xf32>, vector<8x64xf32> -> vector<72x64xf32>
    %c0_69 = arith.constant 0 : index
    %c0_70 = arith.constant 0 : index
    %58 = vector.load %arg4[%c0_69, %c0_70] : memref<8x72xf32, #tpu.memory_space<vmem>>, vector<8x72xf32>
    %cst_71 = arith.constant dense<0.000000e+00> : vector<8x64xf32>
    %59 = tpu.matmul %58, %57, %cst_71 {dimension_numbers = #tpu.dot_dimension_numbers<[1], [0], [0], [1], [0, 0, 1, 1], [], []>} : vector<8x72xf32>, vector<72x64xf32>, vector<8x64xf32> -> vector<8x64xf32>
    %c0_72 = arith.constant 0 : index
    %c0_73 = arith.constant 0 : index
    %60 = vector.load %arg5[%c0_72, %c0_73] : memref<8x1xf32, #tpu.memory_space<vmem>>, vector<8x1xf32>
    %61 = vector.broadcast %60 : vector<8x1xf32> to vector<8x64xf32>
    %62 = arith.addf %59, %61 : vector<8x64xf32>
    %c0_74 = arith.constant 0 : index
    %c0_75 = arith.constant 0 : index
    %63 = vector.load %arg6[%c0_74, %c0_75] : memref<8x4xf32, #tpu.memory_space<vmem>>, vector<8x4xf32>
    %c0_76 = arith.constant 0 : index
    %c12_77 = arith.constant 12 : index
    %c0_78 = arith.constant 0 : index
    %c0_79 = arith.constant 0 : index
    %64 = vector.load %arg1[%c0_76, %c12_77, %c0_78, %c0_79] : memref<1x16x9x9xf32, #tpu.memory_space<vmem>>, vector<1x4x8x8xf32>
    %65 = vector.shape_cast %64 : vector<1x4x8x8xf32> to vector<4x8x8xf32>
    %66 = vector.shape_cast %65 : vector<4x8x8xf32> to vector<4x64xf32>
    %cst_80 = arith.constant dense<0.000000e+00> : vector<8x64xf32>
    %67 = tpu.matmul %63, %66, %cst_80 {dimension_numbers = #tpu.dot_dimension_numbers<[1], [0], [0], [1], [0, 0, 1, 1], [], []>} : vector<8x4xf32>, vector<4x64xf32>, vector<8x64xf32> -> vector<8x64xf32>
    %c0_81 = arith.constant 0 : index
    %c0_82 = arith.constant 0 : index
    %68 = vector.load %arg7[%c0_81, %c0_82] : memref<8x1xf32, #tpu.memory_space<vmem>>, vector<8x1xf32>
    %69 = vector.broadcast %68 : vector<8x1xf32> to vector<8x64xf32>
    %70 = arith.addf %67, %69 : vector<8x64xf32>
    %71 = arith.addf %62, %70 : vector<8x64xf32>
    %cst_83 = arith.constant 0.000000e+00 : f32
    %72 = vector.broadcast %cst_83 : f32 to vector<8x64xf32>
    %73 = arith.maximumf %71, %72 : vector<8x64xf32>
    %c0_84 = arith.constant 0 : index
    %c0_85 = arith.constant 0 : index
    %c0_86 = arith.constant 0 : index
    %74 = vector.load %arg8[%c0_84, %c0_85, %c0_86] : memref<1x8x64xf32, #tpu.memory_space<vmem>>, vector<1x8x64xf32>
    %75 = vector.shape_cast %74 : vector<1x8x64xf32> to vector<8x64xf32>
    %76 = vector.shape_cast %73 : vector<8x64xf32> to vector<1x8x64xf32>
    tpu.vector_store %arg8[%c0_84, %c0_85, %c0_86], %76 {strides = array<i32>} : memref<1x8x64xf32, #tpu.memory_space<vmem>>, vector<1x8x64xf32>,
    return
  }
  func.func @transform_0(%arg0: i32) -> (i32, i32, i32, i32) {
    %c0_i32 = arith.constant 0 : i32
    %c0_i32_0 = arith.constant 0 : i32
    %c0_i32_1 = arith.constant 0 : i32
    %c0_i32_2 = arith.constant 0 : i32
    return %arg0, %c0_i32, %c0_i32_0, %c0_i32_1 : i32, i32, i32, i32
  }
  func.func @transform_1(%arg0: i32) -> (i32, i32) {
    %c0_i32 = arith.constant 0 : i32
    %c0_i32_0 = arith.constant 0 : i32
    %c0_i32_1 = arith.constant 0 : i32
    return %c0_i32, %c0_i32_0 : i32, i32
  }
  func.func @transform_2(%arg0: i32) -> (i32, i32) {
    %c0_i32 = arith.constant 0 : i32
    %c0_i32_0 = arith.constant 0 : i32
    %c0_i32_1 = arith.constant 0 : i32
    return %c0_i32, %c0_i32_0 : i32, i32
  }
  func.func @transform_3(%arg0: i32) -> (i32, i32) {
    %c0_i32 = arith.constant 0 : i32
    %c0_i32_0 = arith.constant 0 : i32
    %c0_i32_1 = arith.constant 0 : i32
    return %c0_i32, %c0_i32_0 : i32, i32
  }
  func.func @transform_4(%arg0: i32) -> (i32, i32) {
    %c0_i32 = arith.constant 0 : i32
    %c0_i32_0 = arith.constant 0 : i32
    %c0_i32_1 = arith.constant 0 : i32
    return %c0_i32, %c0_i32_0 : i32, i32
  }
  func.func @transform_5(%arg0: i32) -> (i32, i32) {
    %c0_i32 = arith.constant 0 : i32
    %c0_i32_0 = arith.constant 0 : i32
    %c0_i32_1 = arith.constant 0 : i32
    return %c0_i32, %c0_i32_0 : i32, i32
  }
  func.func @transform_6(%arg0: i32) -> (i32, i32) {
    %c0_i32 = arith.constant 0 : i32
    %c0_i32_0 = arith.constant 0 : i32
    %c0_i32_1 = arith.constant 0 : i32
    return %c0_i32, %c0_i32_0 : i32, i32
  }
  func.func @transform_7(%arg0: i32) -> (i32, i32, i32) {
    %c0_i32 = arith.constant 0 : i32
    %c0_i32_0 = arith.constant 0 : i32
    %c0_i32_1 = arith.constant 0 : i32
    return %arg0, %c0_i32, %c0_i32_0 : i32, i32, i32
  }
}

</mosaic_0001>

<bundles_post_ra>
// kernel: basic_block_forward.1
= control target key start
LH: loop header
LB: loop body
LE: loop exit
PB: predicated region body
PF: predicated region fallthrough
CT: control target
= control target key end

     0   :  { %s4167_s24 = smov 0   ;;  %s5605_s0 = inlined_call_operand.vmem [shape: f32[2,16,9,9], index: 0, kind: input, shape index: {}]   ;;  %s5606_s1 = inlined_call_operand.vmem [shape: f32[8,36], index: 1, kind: input, shape index: {}]   ;;  %s5607_s2 = inlined_call_operand.vmem [shape: f32[8,1], index: 2, kind: input, shape index: {}]   ;;  %s5608_s3 = inlined_call_operand.vmem [shape: f32[8,72], index: 3, kind: input, shape index: {}]   ;;  %s5609_s4 = inlined_call_operand.vmem [shape: f32[8,1], index: 4, kind: input, shape index: {}]   ;;  %s5610_s5 = inlined_call_operand.vmem [shape: f32[8,4], index: 5, kind: input, shape index: {}]   ;;  %s5611_s6 = inlined_call_operand.vmem [shape: f32[8,1], index: 6, kind: input, shape index: {}]   ;;  %s5612_s7 = inlined_call_operand.vmem [shape: f32[2,8,64], index: 7, kind: output, shape index: {}]  }
   0x1 LB: > { %s3665_s25 = sadd.s32 4294967295, %s4102_s24   ;;  %p3669_p0 = scmp.ge.s32.totalorder %s4102_s24, 1  ;;  %s4102_s24 = sphi %s4167_s24, %s17_s24  }
   0x2   : > { %p237_p1 = scmp.lt.s32.totalorder %s4102_s24, 3 }
   0x4   : > { %p238_p2 = pnand %p3669_p0, %p237_p1 }
   0x6   : > { %241 = sbr.rel (%p238_p2) target bundleno = 1359 (0x54f), region = 48 }
   0xd   : > { %p268_p3 = scmp.lt.s32.totalorder %s3665_s25, 1  ;;  %v286_v0 = vlaneseq  ;;  %v4104_v1 = vmov 1983009808   ;;  %v4105_v7 = vmov 1934713408   ;;  %s4106_s30 = smov 127  }
   0xe   : > { %v284_v2 = vunpack.c.l.s4 %v4104_v1  ;;  %v316_v8 = vunpack.c.l.s4 %v4105_v7  ;;  %s4108_s8 = smov 16   ;;  %s4109_s9 = smov 8   ;;  %vm4116_vm0 = vmmov 0   ;;  %vm377_vm1 = vcmask 64512  }
   0xf   : > { %s5656_s25 = smov (!%p268_p3, %s3665_s25), 1  ;;  %v287_v4 = vshrl.u32 %v286_v0, 7  ;;  %s4110_s10 = smov 24   ;;  %vm379_vm2 = vcmask 130048   ;;  %vm381_vm3 = vcmask 195584   ;;  %vm383_vm4 = vcmask 261120  }
  0x10   : > { %v285_v3 = vunpack.c.0.s8 %v284_v2  ;;  %s3700_s26 = sshll.u32 %s5656_s25, 8  ;;  %v317_v25 = vunpack.c.0.s8 %v316_v8  ;;  %s4111_s11 = smov 48   ;;  %vm385_vm5 = vcmask 326656   ;;  %vm387_vm6 = vcmask 392192  }
  0x11   : > { %s4181_s29 = scalar_lea.vmem %s5605_s0, %s3700_s26  ;;  %s4112_s12 = smov 32   ;;  %vm389_vm7 = vcmask 457728   ;;  %vm1298_vm8 = vcmask 1043456   ;;  %vm1310_vm9 = vcmask 293888   ;;  %vm1388_vm10 = vcmask 80896  }
  0x12   : > { %v4184_v5 = vld [vmem:[%s4181_s29 + $0x20] sm:$0xff]  ;;  %v4191_v9 = vsub.s32 %v285_v3, %v287_v4  ;;  %v280_v12 = vld [vmem:[%s4181_s29 + $0x30] sm:$0xff]  ;;  %v4237_v42 = vsub.s32 %v317_v25, %v287_v4  ;;  %s4113_s13 = smov 40   ;;  %s4114_s14 = smov 56   ;;  %vm1390_vm11 = vcmask 74752   ;;  %vm1596_vm12 = vcmask 72712  }
  0x13   : > { %v4187_v6 = vld [vmem:[%s4181_s29] sm:$0xff]  ;;  %507 = vrot.lane.b32.xlu1 %v4184_v5, %s4106_s30  ;;  %v278_v13 = vld [vmem:[%s4181_s29 + $0x10] sm:$0xff]  ;;  %s4118_s19 = smov 112   ;;  %s4119_s20 = smov 120   ;;  %vm3343_vm13 = vcmask 588800   ;;  %vm3531_vm14 = vcmask 31744  }
  0x14   : > { %503 = vrot.lane.b32.xlu0 %v4187_v6, %s4106_s30  ;;  %v281_v10 = vcombine.low %v4187_v6, %v4184_v5  ;;  %v282_v11 = vcombine.high %v4187_v6, %v4184_v5  ;;  %v297_v14 = vcombine.low %v278_v13, %v280_v12  ;;  %v298_v15 = vcombine.high %v278_v13, %v280_v12  ;;  %v3678_v16 = vld [vmem:[%s4181_s29 + $0x90] sm:$0xff]  ;;  %v3677_v19 = vld [vmem:[%s4181_s29 + $0x80] sm:$0xff]  ;;  %s4120_s21 = smov 96   ;;  %s4121_s22 = smov 104  }
  0x15   : > { %v3680_v17 = vld [vmem:[%s4181_s29 + $0xb0] sm:$0xff]  ;;  %v3679_v21 = vld [vmem:[%s4181_s29 + $0xa0] sm:$0xff]  ;;  %v5615_v6 = vmov 0.0   ;;  %s4122_s23 = smov 80   ;;  %s4123_s26 = smov 88   ;;  %vm3610_vm15 = vcmask 523264  }
  0x16   : > { %v4204_v18 = vrot.slane %v281_v10, %v4191_v9  ;;  %v639_v20 = vcombine.low %v3678_v16, %v3680_v17  ;;  %v4209_v22 = vrot.slane %v297_v14, %v4191_v9  ;;  %v623_v23 = vcombine.low %v3677_v19, %v3679_v21  ;;  %v4212_v24 = vld [vmem:[%s4181_s29 + $0x11] sm:$0xff]  ;;  %v3673_v26 = vld [vmem:[%s4181_s29 + $0x40] sm:$0xff]  ;;  %3729 = vmatprep.mubr.msk.f32.mxu0 %vm4116_vm0, %v5615_v6  ;;  %s4124_s27 = smov 72   ;;  %s4125_s28 = smov 1  }
  0x17   : > { %v3674_v27 = vld [vmem:[%s4181_s29 + $0x50] sm:$0xff]  ;;  %509 = vrot.lane.b32.xlu1 %v280_v12, %s4106_s30  ;;  %v3675_v29 = vld [vmem:[%s4181_s29 + $0x60] sm:$0xff]  ;;  %v640_v36 = vcombine.high %v3678_v16, %v3680_v17  ;;  %v624_v40 = vcombine.high %v3677_v19, %v3679_v21  ;;  %v4259_v62 = vrot.slane %v282_v11, %v4191_v9  ;;  %v4265_v1 = vrot.slane %v298_v15, %v4191_v9  ;;  %s4126_s15 = smov 126  }
  0x18   : > { %505 = vrot.lane.b32.xlu0 %v278_v13, %s4106_s30  ;;  %v647_v28 = vrot.slane %v639_v20, %v4191_v9  ;;  %v3676_v30 = vld [vmem:[%s4181_s29 + $0x70] sm:$0xff]  ;;  %v313_v31 = vcombine.low %v4204_v18, %v4209_v22  ;;  %v631_v32 = vrot.slane %v623_v23, %v4191_v9  ;;  %v4225_v33 = vld [vmem:[%s4181_s29 + $0x1] sm:$0xff]  ;;  %v396_v39 = vcombine.low %v3673_v26, %v3675_v29 }
  0x19   : > { %v4228_v34 = vld [vmem:[%s4181_s29 + $0x31] sm:$0xff]  ;;  %v4231_v35 = vld [vmem:[%s4181_s29 + $0x21] sm:$0xff]  ;;  %v412_v43 = vcombine.low %v3674_v27, %v3676_v30  ;;  %v397_v46 = vcombine.high %v3673_v26, %v3675_v29  ;;  %v654_v47 = vrot.slane %v640_v36, %v4191_v9  ;;  %v413_v50 = vcombine.high %v3674_v27, %v3676_v30  ;;  %3750 = vmatprep.mubr.msk.f32.mxu1 %vm4116_vm0, %v5615_v6 }
  0x1a   : > { %v973_v37 = vcombine.low %v4212_v24, %v4228_v34  ;;  %v957_v38 = vcombine.low %v4225_v33, %v4231_v35  ;;  %v655_v41 = vcombine.low %v631_v32, %v647_v28  ;;  %v404_v44 = vrot.slane %v396_v39, %v4191_v9  ;;  %v3681_v51 = vld [vmem:[%s4181_s29 + $0xc0] sm:$0xff]  ;;  %v3682_v57 = vld [vmem:[%s4181_s29 + $0xd0] sm:$0xff]  ;;  %1389 = vst.msk [vmem:[#allocation2] sm:$0xff] %vm1388_vm10, %v5615_v6 }
  0x1b   : > { %840 = vrot.lane.b32.xlu1 %v3678_v16, %s4106_s30  ;;  %v420_v45 = vrot.slane %v412_v43, %v4191_v9  ;;  %v3683_v52 = vld [vmem:[%s4181_s29 + $0xe0] sm:$0xff]  ;;  %v638_v53 = vrot.slane %v624_v40, %v4191_v9  ;;  %v656_v54 = vcombine.high %v631_v32, %v647_v28  ;;  %v3684_v58 = vld [vmem:[%s4181_s29 + $0xf0] sm:$0xff]  ;;  %v411_v60 = vrot.slane %v397_v46, %v4191_v9 }
  0x1c   : > { %838 = vrot.lane.b32.xlu0 %v3677_v19, %s4106_s30  ;;  %v981_v48 = vrot.slane %v973_v37, %v4191_v9  ;;  %v965_v49 = vrot.slane %v957_v38, %v4191_v9  ;;  %v4250_v56 = vrot.slane %v655_v41, %v4237_v42  ;;  %v427_v61 = vrot.slane %v413_v50, %v4191_v9 }
  0x1d   : > { %v428_v55 = vcombine.low %v404_v44, %v420_v45  ;;  %v429_v59 = vcombine.high %v404_v44, %v420_v45  ;;  %v731_v0 = vcombine.low %v3681_v51, %v3683_v52  ;;  %v974_v2 = vcombine.high %v4212_v24, %v4228_v34  ;;  %1391 = vst.msk [vmem:[#allocation2 + $0x8] sm:$0x3] %vm1390_vm11, %v5615_v6 }
  0x1e   : > { %v989_v3 = vcombine.low %v965_v49, %v981_v48  ;;  %v747_v4 = vcombine.low %v3682_v57, %v3684_v58  ;;  %v670_v5 = vrot.slane %v656_v54, %v4237_v42  ;;  %v687_v7 = vcombine.high %v4250_v56, %v5615_v6  ;;  %1392 = vst.msk [vmem:[#allocation2 + $0x10] sm:$0xff] %vm1388_vm10, %v5615_v6 }
  0x1f   : > { %844 = vrot.lane.b32.xlu1 %v3680_v17, %s4106_s30  ;;  %v4262_v63 = vrot.slane %v428_v55, %v4237_v42  ;;  %v445_v8 = vcombine.high %v411_v60, %v427_v61  ;;  %v672_v10 = vcombine.high %v638_v53, %v654_v47  ;;  %v443_v11 = vrot.slane %v429_v59, %v4237_v42 }
  0x20   : > { %842 = vrot.lane.b32.xlu0 %v3679_v21, %s4106_s30  ;;  %v739_v13 = vrot.slane %v731_v0, %v4191_v9  ;;  %v958_v14 = vcombine.high %v4225_v33, %v4231_v35  ;;  %v990_v15 = vcombine.high %v965_v49, %v981_v48  ;;  %v688_v16 = vcombine.high %v670_v5, %v5615_v6 }
  0x21   : > { %v460_v12 = vcombine.high %v4262_v63, %v5615_v6  ;;  %v755_v17 = vrot.slane %v747_v4, %v4191_v9  ;;  %v461_v19 = vcombine.high %v443_v11, %v5615_v6  ;;  %v444_v20 = vcombine.low %v411_v60, %v427_v61  ;;  %1393 = vst.msk [vmem:[#allocation2 + $0x18] sm:$0x3] %vm1390_vm11, %v5615_v6 }
  0x22   : > { %v671_v21 = vcombine.low %v638_v53, %v654_v47  ;;  %v4286_v23 = vrot.slane %v989_v3, %v4237_v42  ;;  %v686_v25 = vrot.slane %v672_v10, %v4237_v42  ;;  %v3815_v28 = vpack.i.bf16 %v670_v5, %v443_v11  ;;  %1394 = vst.msk [vmem:[#allocation2 + $0x20] sm:$0xff] %vm1388_vm10, %v5615_v6 }
  0x23   : > { %1173 = vrot.lane.b32.xlu1 %v4212_v24, %s4106_s30  ;;  %v459_v24 = vrot.slane %v445_v8, %v4237_v42  ;;  %v763_v26 = vcombine.low %v739_v13, %v755_v17  ;;  %v764_v27 = vcombine.high %v739_v13, %v755_v17  ;;  %v3810_v29 = vpack.i.bf16 %v687_v7, %v460_v12 }
  0x24   : > { %1171 = vrot.lane.b32.xlu0 %v4225_v33, %s4106_s30  ;;  %v732_v30 = vcombine.high %v3681_v51, %v3683_v52  ;;  %v988_v32 = vrot.slane %v974_v2, %v4191_v9  ;;  %v972_v33 = vrot.slane %v958_v14, %v4191_v9  ;;  %v748_v37 = vcombine.high %v3682_v57, %v3684_v58 }
  0x25   : > { %v4297_v36 = vrot.slane %v763_v26, %v4237_v42  ;;  %v3820_v38 = vpack.i.bf16 %v688_v16, %v461_v19  ;;  %v452_v39 = vrot.slane %v444_v20, %v4237_v42  ;;  %v679_v40 = vrot.slane %v671_v21, %v4237_v42  ;;  %v3686_v26 = vld [vmem:[%s4181_s29 + $0x51] sm:$0xff]  ;;  %1395 = vst.msk [vmem:[#allocation2 + $0x28] sm:$0x3] %vm1390_vm11, %v5615_v6 }
  0x26   : > { %v4304_v41 = vrot.slane %v764_v27, %v4237_v42  ;;  %v1004_v43 = vrot.slane %v990_v15, %v4237_v42  ;;  %v746_v44 = vrot.slane %v732_v30, %v4191_v9  ;;  %v762_v46 = vrot.slane %v748_v37, %v4191_v9  ;;  %v3687_v27 = vld [vmem:[%s4181_s29 + $0x61] sm:$0xff]  ;;  %1396 = vst.msk [vmem:[#allocation2 + $0x30] sm:$0xff] %vm1388_vm10, %v5615_v6 }
  0x27   : > { %1177 = vrot.lane.b32.xlu1 %v4228_v34, %s4106_s30  ;;  %5622 = vst [vmem:[#allocation3_spill] sm:$0xff] %v4297_v36  ;;  %v1021_v34 = vcombine.high %v4286_v23, %v5615_v6  ;;  %v4312_v45 = vcombine.high %v4297_v36, %v5615_v6  ;;  %v329_v47 = vcombine.low %v4259_v62, %v4265_v1  ;;  %1397 = vst.msk [vmem:[#allocation2 + $0x38] sm:$0x3] %vm1390_vm11, %v5615_v6 }
  0x28   : > { %1175 = vrot.lane.b32.xlu0 %v4231_v35, %s4106_s30  ;;  %v3835_v35 = vpack.i.bf16 %v686_v25, %v459_v24  ;;  %v3825_v48 = vpack.i.bf16 %v679_v40, %v452_v39  ;;  %v462_v49 = vcombine.high %v452_v39, %v5615_v6  ;;  %v314_v50 = vcombine.high %v4204_v18, %v4209_v22 }
  0x29   : > { %v689_v51 = vcombine.high %v679_v40, %v5615_v6  ;;  %v1022_v52 = vcombine.high %v1004_v43, %v5615_v6  ;;  %v1005_v53 = vcombine.low %v972_v33, %v988_v32  ;;  %v330_v54 = vcombine.high %v4259_v62, %v4265_v1  ;;  %1398 = vst.msk [vmem:[#allocation2 + $0x40] sm:$0xff] %vm1388_vm10, %v5615_v6 }
  0x2a   : > { %v3845_v55 = vpack.i.bf16 %v1021_v34, %v4312_v45  ;;  %v4329_v57 = vcombine.high %v4304_v41, %v5615_v6  ;;  %v779_v58 = vcombine.low %v746_v44, %v762_v46  ;;  %v463_v59 = vcombine.high %v459_v24, %v5615_v6  ;;  %1399 = vst.msk [vmem:[#allocation2 + $0x48] sm:$0x3] %vm1390_vm11, %v5615_v6 }
  0x2b   : > { %3816 = vrot.lane.b32.xlu1 %v3815_v28, %s4108_s8  ;;  %v3830_v60 = vpack.i.bf16 %v689_v51, %v462_v49  ;;  %v690_v61 = vcombine.high %v686_v25, %v5615_v6  ;;  %v1013_v0 = vrot.slane %v1005_v53, %v4237_v42  ;;  %v1006_v2 = vcombine.high %v972_v33, %v988_v32  ;;  %v3685_v25 = vld [vmem:[%s4181_s29 + $0x41] sm:$0xff]  ;;  %v3688_v28 = vld [vmem:[%s4181_s29 + $0x71] sm:$0xff] }
  0x2c   : > { %3811 = vrot.lane.b32.xlu0 %v3810_v29, %s4109_s9  ;;  %v3855_v3 = vpack.i.bf16 %v1022_v52, %v4329_v57  ;;  %v787_v4 = vrot.slane %v779_v58, %v4237_v42  ;;  %v780_v5 = vcombine.high %v746_v44, %v762_v46  ;;  %v3850_v14 = vpack.i.bf16 %v1004_v43, %v4304_v41 }
  0x2d   : > { %v3840_v7 = vpack.i.bf16 %v690_v61, %v463_v59  ;;  %v1023_v8 = vcombine.high %v1013_v0, %v5615_v6  ;;  %v1020_v10 = vrot.slane %v1006_v2, %v4237_v42  ;;  %v1064_v37 = vcombine.low %v3685_v25, %v3687_v27  ;;  %1400 = vst.msk [vmem:[#allocation2 + $0x50] sm:$0xff] %vm1388_vm10, %v5615_v6 }
  0x2e   : > { %v3860_v11 = vpack.i.bf16 %v1013_v0, %v787_v4  ;;  %v797_v12 = vcombine.high %v787_v4, %v5615_v6  ;;  %v794_v13 = vrot.slane %v780_v5, %v4237_v42  ;;  %v1065_v34 = vcombine.high %v3685_v25, %v3687_v27  ;;  %1401 = vst.msk [vmem:[#allocation2 + $0x58] sm:$0x3] %vm1390_vm11, %v5615_v6 }
  0x2f   : > { %3821 = vrot.lane.b32.xlu1 %v3820_v38, %s4110_s10  ;;  %v1024_v17 = vcombine.high %v1020_v10, %v5615_v6  ;;  %v1080_v38 = vcombine.low %v3686_v26, %v3688_v28  ;;  %v4362_v52 = vrot.slane %v1064_v37, %v4191_v9  ;;  %v4369_v59 = vrot.slane %v329_v47, %v4237_v42 }
  0x30   : > { %3836 = vrot.lane.b32.xlu0 %v3835_v35, %s4111_s11  ;;  %v3865_v15 = vpack.i.bf16 %v1023_v8, %v797_v12  ;;  %v798_v16 = vcombine.high %v794_v13, %v5615_v6  ;;  %v3870_v19 = vpack.i.bf16 %v1020_v10, %v794_v13  ;;  %v1081_v35 = vcombine.high %v3686_v26, %v3688_v28 }
  0x31   : > { %v1088_v53 = vrot.slane %v1080_v38, %v4191_v9  ;;  %v328_v61 = vrot.slane %v314_v50, %v4237_v42  ;;  %v1079_v0 = vrot.slane %v1065_v34, %v4191_v9  ;;  %v4385_v47 = vrot.slane %v330_v54, %v4237_v42  ;;  %1402 = vst.msk [vmem:[#allocation2 + $0x60] sm:$0xff] %vm1388_vm10, %v5615_v6 }
  0x32   : > { %v3875_v20 = vpack.i.bf16 %v1024_v17, %v798_v16  ;;  %v1095_v2 = vrot.slane %v1081_v35, %v4191_v9  ;;  %1403 = vst.msk [vmem:[#allocation2 + $0x68] sm:$0x3] %vm1390_vm11, %v5615_v6  ;;  %1405 = vst.msk [vmem:[#allocation2 + $0x78] sm:$0x3] %vm1390_vm11, %v5615_v6 }
  0x33   : > { %3826 = vrot.lane.b32.xlu1 %v3825_v48, %s4112_s12  ;;  %v1097_v50 = vcombine.high %v4362_v52, %v1088_v53  ;;  %1404 = vst.msk [vmem:[#allocation2 + $0x70] sm:$0xff] %vm1388_vm10, %v5615_v6 }
  0x34   : > { %3846 = vrot.lane.b32.xlu0 %v3845_v55, %s4109_s9  ;;  %v1112_v17 = vcombine.low %v1079_v0, %v1095_v2  ;;  %v1113_v27 = vcombine.high %v1079_v0, %v1095_v2 }
  0x36   : > { %v1127_v35 = vrot.slane %v1113_v27, %v4237_v42 }
  0x37   : > { %3831 = vrot.lane.b32.xlu1 %v3830_v60, %s4113_s13 }
  0x38   : > { %3856 = vrot.lane.b32.xlu0 %v3855_v3, %s4110_s10 }
  0x3b   : > { %3841 = vrot.lane.b32.xlu1 %v3840_v7, %s4114_s14 }
  0x3c   : > { %3861 = vrot.lane.b32.xlu0 %v3860_v11, %s4112_s12 }
  0x3f   : > { %3851 = vrot.lane.b32.xlu1 %v3850_v14, %s4108_s8 }
  0x40   : > { %3866 = vrot.lane.b32.xlu0 %v3865_v15, %s4113_s13 }
  0x43   : > { %3876 = vrot.lane.b32.xlu1 %v3875_v20, %s4114_s14 }
  0x44   : > { %3871 = vrot.lane.b32.xlu0 %v3870_v19, %s4111_s11 }
  0x85   : > { %v508_v21 = vpop.permute.xlu1 %507 }
  0x86   : > { %v504_v24 = vpop.permute.xlu0 %503 }
  0x87   : > { %v515_v29 = vcombine.low %v504_v24, %v508_v21  ;;  %v516_v30 = vcombine.high %v504_v24, %v508_v21  ;;  %v4405_v24 = vrot.slane %v313_v31, %v4237_v42 }
  0x89   : > { %v510_v32 = vpop.permute.xlu1 %509  ;;  %v523_v43 = vrot.slane %v515_v29, %v4191_v9  ;;  %v530_v44 = vrot.slane %v516_v30, %v4191_v9  ;;  %v345_v31 = vcombine.high %v4405_v24, %v5615_v6 }
  0x8a   : > { %v506_v33 = vpop.permute.xlu0 %505 }
  0x8b   : > { %v531_v39 = vcombine.low %v506_v33, %v510_v32  ;;  %v532_v40 = vcombine.high %v506_v33, %v510_v32  ;;  %v1111_v32 = vrot.slane %v1097_v50, %v4237_v42  ;;  %v1120_v33 = vrot.slane %v1112_v17, %v4237_v42 }
  0x8d   : > { %v539_v46 = vrot.slane %v531_v39, %v4191_v9  ;;  %v546_v48 = vrot.slane %v532_v40, %v4191_v9  ;;  %v841_v49 = vpop.permute.xlu1 %840  ;;  %v1096_v39 = vcombine.low %v4362_v52, %v1088_v53  ;;  %v346_v53 = vcombine.high %v328_v61, %v5615_v6 }
  0x8e   : > { %v839_v51 = vpop.permute.xlu0 %838 }
  0x8f   : > { %v548_v55 = vcombine.high %v523_v43, %v539_v46  ;;  %v563_v58 = vcombine.low %v530_v44, %v546_v48  ;;  %v564_v60 = vcombine.high %v530_v44, %v546_v48  ;;  %v547_v5 = vcombine.low %v523_v43, %v539_v46 }
  0x91   : > { %v4378_v3 = vrot.slane %v563_v58, %v4237_v42  ;;  %v562_v4 = vrot.slane %v548_v55, %v4237_v42  ;;  %v845_v7 = vpop.permute.xlu1 %844  ;;  %v578_v16 = vrot.slane %v564_v60, %v4237_v42  ;;  %v4408_v28 = vrot.slane %v547_v5, %v4237_v42 }
  0x92   : > { %v843_v8 = vpop.permute.xlu0 %842  ;;  %v866_v10 = vcombine.low %v841_v49, %v845_v7  ;;  %v867_v11 = vcombine.high %v841_v49, %v845_v7  ;;  %v4431_v58 = vrot.slane %v1096_v39, %v4237_v42  ;;  %v1129_v7 = vcombine.high %v1111_v32, %v5615_v6 }
  0x93   : > { %v850_v12 = vcombine.low %v839_v51, %v843_v8  ;;  %v851_v13 = vcombine.high %v839_v51, %v843_v8  ;;  %v3885_v14 = vpack.i.bf16 %v4378_v3, %v4369_v59  ;;  %v3880_v15 = vpack.i.bf16 %v562_v4, %v328_v61 }
  0x94   : > { %v874_v19 = vrot.slane %v866_v10, %v4191_v9  ;;  %v881_v20 = vrot.slane %v867_v11, %v4191_v9  ;;  %v3895_v30 = vpack.i.bf16 %v578_v16, %v4385_v47  ;;  %v579_v43 = vcombine.high %v4408_v28, %v5615_v6 }
  0x95   : > { %v858_v62 = vrot.slane %v850_v12, %v4191_v9  ;;  %v865_v1 = vrot.slane %v851_v13, %v4191_v9  ;;  %3886 = vrot.lane.b32.xlu1 %v3885_v14, %s4112_s12  ;;  %3881 = vrot.lane.b32.xlu0 %v3880_v15, %s4108_s8  ;;  %v4397_v54 = vpop.permute.xlu1 %1173  ;;  %v580_v2 = vcombine.high %v562_v4, %v5615_v6 }
  0x96   : > { %v4399_v21 = vpop.permute.xlu0 %1171  ;;  %v3910_v52 = vpack.i.bf16 %v579_v43, %v345_v31  ;;  %v1128_v8 = vcombine.high %v4431_v58, %v5615_v6  ;;  %v348_v11 = vcombine.high %v4385_v47, %v5615_v6  ;;  %v347_v12 = vcombine.high %v4369_v59, %v5615_v6 }
  0x97   : > { %v883_v25 = vcombine.high %v858_v62, %v874_v19  ;;  %v898_v26 = vcombine.low %v865_v1, %v881_v20  ;;  %v899_v29 = vcombine.high %v865_v1, %v881_v20  ;;  %v882_v44 = vcombine.low %v858_v62, %v874_v19 }
  0x98   : > { %v3915_v50 = vpack.i.bf16 %v580_v2, %v346_v53  ;;  %v582_v15 = vcombine.high %v578_v16, %v5615_v6  ;;  %v581_v17 = vcombine.high %v4378_v3, %v5615_v6  ;;  %v5613_v1 = vmov 0.0|0.0  }
  0x99   : > { %v897_v37 = vrot.slane %v883_v25, %v4237_v42  ;;  %v906_v38 = vrot.slane %v898_v26, %v4237_v42  ;;  %3896 = vrot.lane.b32.xlu0 %v3895_v30, %s4111_s11  ;;  %v1178_v18 = vpop.permute.xlu1 %1177  ;;  %v913_v49 = vrot.slane %v899_v29, %v4237_v42  ;;  %v4435_v5 = vrot.slane %v882_v44, %v4237_v42 }
  0x9a   : > { %v1176_v22 = vpop.permute.xlu0 %1175  ;;  %v1199_v40 = vcombine.low %v4397_v54, %v1178_v18  ;;  %v1200_v13 = vcombine.high %v4397_v54, %v1178_v18  ;;  %3758 = vmatprep.subr.bf16.mxu0 %v5613_v1  ;;  %v3935_v59 = vpack.i.bf16 %v582_v15, %v348_v11  ;;  %v3925_v47 = vpack.i.bf16 %v581_v17, %v347_v12 }
  0x9b   : > { %v1183_v34 = vcombine.low %v4399_v21, %v1176_v22  ;;  %v3890_v46 = vpack.i.bf16 %v1111_v32, %v897_v37  ;;  %v3900_v48 = vpack.i.bf16 %v1120_v33, %v906_v38  ;;  %v3905_v60 = vpack.i.bf16 %v1127_v35, %v913_v49  ;;  %3764 = vmatprep.subr.bf16.mxu1 %v5613_v1 }
  0x9c   : > { %v1207_v51 = vrot.slane %v1199_v40, %v4191_v9  ;;  %v915_v10 = vcombine.high %v897_v37, %v5615_v6  ;;  %v914_v4 = vcombine.high %v4435_v5, %v5615_v6  ;;  %v1184_v14 = vcombine.high %v4399_v21, %v1176_v22 }
  0x9d   : > { %v1191_v55 = vrot.slane %v1183_v34, %v4191_v9  ;;  %3891 = vrot.lane.b32.xlu1 %v3890_v46, %s4108_s8  ;;  %3901 = vrot.lane.b32.xlu0 %v3900_v48, %s4112_s12  ;;  %v1130_v54 = vcombine.high %v1120_v33, %v5615_v6  ;;  %v1214_v16 = vrot.slane %v1200_v13, %v4191_v9  ;;  %v4117_v22 = vmov 0   ;;  %v1304_v34 = vld [vmem:[%s5607_s2] sm:$0xff]  ;;  %v3817_v43 = vpop.permute.xlu1 %3816 }
  0x9e   : > { %v3930_v20 = vpack.i.bf16 %v1129_v7, %v915_v10  ;;  %v3920_v62 = vpack.i.bf16 %v1128_v8, %v914_v4  ;;  %v1198_v3 = vrot.slane %v1184_v14, %v4191_v9  ;;  %v916_v21 = vcombine.high %v906_v38, %v5615_v6  ;;  %3950 = vset.pattern.permute.xlu1 %v4117_v22 }
  0x9f   : > { %v1216_v0 = vcombine.high %v1191_v55, %v1207_v51  ;;  %v1215_v19 = vcombine.low %v1191_v55, %v1207_v51  ;;  %v1131_v26 = vcombine.high %v1127_v35, %v5615_v6  ;;  %v917_v30 = vcombine.high %v913_v49, %v5615_v6  ;;  %4091 = vset.pattern.permute.xlu0 %v4117_v22  ;;  %v3812_v35 = vpop.permute.xlu0 %3811 }
  0xa0   : > { %v3940_v27 = vpack.i.bf16 %v1130_v54, %v916_v21  ;;  %v1231_v32 = vcombine.low %v1198_v3, %v1214_v16  ;;  %v1232_v18 = vcombine.high %v1198_v3, %v1214_v16  ;;  %v3813_v2 = vunpack.i.l.bf16 %v3812_v35 }
  0xa1   : > { %3906 = vrot.lane.b32.xlu1 %v3905_v60, %s4111_s11  ;;  %3911 = vrot.lane.b32.xlu0 %v3910_v52, %s4109_s9  ;;  %v1230_v61 = vrot.slane %v1216_v0, %v4237_v42  ;;  %v4466_v25 = vrot.slane %v1215_v19, %v4237_v42  ;;  %v3945_v33 = vpack.i.bf16 %v1131_v26, %v917_v30  ;;  %v3822_v46 = vpop.permute.xlu1 %3821  ;;  %v3814_v0 = vunpack.i.h.bf16 %v3812_v35 }
  0xa2   : > { %v1239_v38 = vrot.slane %v1231_v32, %v4237_v42  ;;  %v1246_v39 = vrot.slane %v1232_v18, %v4237_v42  ;;  %v3819_v8 = vunpack.i.h.bf16 %v3817_v43  ;;  %v492_v10 = vsel %vm377_vm1, %v4262_v63, %v3813_v2 }
  0xa3   : > { %v1247_v29 = vcombine.high %v4466_v25, %v5615_v6  ;;  %v1248_v37 = vcombine.high %v1230_v61, %v5615_v6  ;;  %v3837_v44 = vpop.permute.xlu0 %3836  ;;  %v3824_v11 = vunpack.i.h.bf16 %v3822_v46  ;;  %v3823_v12 = vunpack.i.l.bf16 %v3822_v46 }
  0xa4   : > { %v1249_v31 = vcombine.high %v1239_v38, %v5615_v6  ;;  %v1250_v40 = vcombine.high %v1246_v39, %v5615_v6 }
  0xa5   : > { %1256 = vrot.lane.b32.xlu1 %v1230_v61, %s4108_s8  ;;  %3916 = vrot.lane.b32.xlu0 %v3915_v50, %s4110_s10  ;;  %v3827_v49 = vpop.permute.xlu1 %3826  ;;  %v3818_v61 = vunpack.i.l.bf16 %v3817_v43  ;;  %v719_v50 = vsel %vm377_vm1, %v4250_v56, %v3814_v0 }
  0xa6   : > { %v720_v14 = vsel %vm379_vm2, %v719_v50, %v3819_v8  ;;  %v3829_v19 = vunpack.i.h.bf16 %v3827_v49 }
  0xa7   : > { %v3847_v48 = vpop.permute.xlu0 %3846  ;;  %v493_v13 = vsel %vm379_vm2, %v492_v10, %v3818_v61  ;;  %v721_v63 = vsel %vm381_vm3, %v720_v14, %v3824_v11 }
  0xa8   : > { %v494_v56 = vsel %vm381_vm3, %v493_v13, %v3823_v12  ;;  %v722_v3 = vsel %vm383_vm4, %v721_v63, %v3829_v19  ;;  %v3849_v21 = vunpack.i.h.bf16 %v3847_v48  ;;  %v3848_v26 = vunpack.i.l.bf16 %v3847_v48 }
  0xa9   : > { %3931 = vrot.lane.b32.xlu1 %v3930_v20, %s4110_s10  ;;  %3921 = vrot.lane.b32.xlu0 %v3920_v62, %s4109_s9  ;;  %v3832_v55 = vpop.permute.xlu1 %3831  ;;  %v3828_v20 = vunpack.i.l.bf16 %v3827_v49 }
  0xaa   : > { %v3834_v62 = vunpack.i.h.bf16 %v3832_v55  ;;  %v1053_v22 = vsel %vm377_vm1, %v4286_v23, %v3849_v21 }
  0xab   : > { %v4494_v51 = vpop.permute.xlu0 %3856  ;;  %v495_v16 = vsel %vm383_vm4, %v494_v56, %v3828_v20 }
  0xac   : > { %v723_v32 = vsel %vm385_vm5, %v722_v3, %v3834_v62  ;;  %v3858_v35 = vunpack.i.l.bf16 %v4494_v51 }
  0xad   : > { %3936 = vrot.lane.b32.xlu1 %v3935_v59, %s4114_s14  ;;  %3926 = vrot.lane.b32.xlu0 %v3925_v47, %s4113_s13  ;;  %v3842_v53 = vpop.permute.xlu1 %3841  ;;  %v3833_v59 = vunpack.i.l.bf16 %v3832_v55 }
  0xaf   : > { %v4496_v52 = vpop.permute.xlu0 %3861  ;;  %v496_v30 = vsel %vm385_vm5, %v495_v16, %v3833_v59 }
  0xb0   : > { %v3864_v55 = vunpack.i.h.bf16 %v4496_v52 }
  0xb1   : > { %3941 = vrot.lane.b32.xlu1 %v3940_v27, %s4113_s13  ;;  %1252 = vrot.lane.b32.xlu0 %v1247_v29, %s4109_s9  ;;  %v3852_v7 = vpop.permute.xlu1 %3851  ;;  %v3839_v27 = vunpack.i.h.bf16 %v3837_v44  ;;  %v3838_v29 = vunpack.i.l.bf16 %v3837_v44 }
  0xb3   : > { %v4498_v60 = vpop.permute.xlu0 %3866  ;;  %v497_v43 = vsel %vm387_vm6, %v496_v30, %v3838_v29  ;;  %v724_v44 = vsel %vm387_vm6, %v723_v32, %v3839_v27 }
  0xb4   : > { %v3868_v13 = vunpack.i.l.bf16 %v4498_v60 }
  0xb5   : > { %3946 = vrot.lane.b32.xlu1 %v3945_v33, %s4114_s14  ;;  %1260 = vrot.lane.b32.xlu0 %v1248_v37, %s4110_s10  ;;  %v4508_v15 = vpop.permute.xlu1 %3876  ;;  %v3854_v33 = vunpack.i.h.bf16 %v3852_v7  ;;  %v3853_v37 = vunpack.i.l.bf16 %v3852_v7 }
  0xb7   : > { %v4504_v4 = vpop.permute.xlu0 %3871  ;;  %v1054_v48 = vsel %vm379_vm2, %v1053_v22, %v3854_v33 }
  0xb8   : > { %v3874_v59 = vunpack.i.h.bf16 %v4504_v4  ;;  %v3873_v16 = vunpack.i.l.bf16 %v4504_v4 }
  0xb9   : > { %1264 = vrot.lane.b32.xlu1 %v1239_v38, %s4112_s12  ;;  %1268 = vrot.lane.b32.xlu0 %v1249_v31, %s4113_s13  ;;  %v827_v31 = vsel %vm377_vm1, %v4297_v36, %v3848_v26 }
  0xba   : > { %v828_v46 = vsel %vm379_vm2, %v827_v31, %v3853_v37 }
  0xbb   : > { %v829_v2 = vsel %vm381_vm3, %v828_v46, %v3858_v35 }
  0xbd   : > { %1272 = vrot.lane.b32.xlu1 %v1246_v39, %s4111_s11  ;;  %1276 = vrot.lane.b32.xlu0 %v1250_v40, %s4114_s14  ;;  %v3844_v39 = vunpack.i.h.bf16 %v3842_v53  ;;  %v3843_v40 = vunpack.i.l.bf16 %v3842_v53  ;;  %v3863_v53 = vunpack.i.l.bf16 %v4496_v52  ;;  %v3869_v52 = vunpack.i.h.bf16 %v4498_v60 }
  0xbf   : > { %v4539_v0 = vsel %vm389_vm7, %v497_v43, %v3843_v40  ;;  %v830_v14 = vsel %vm383_vm4, %v829_v2, %v3863_v53 }
  0xc0   : > { %v1287_v11 = vrot.slane %v4539_v0, 4 }
  0xc1   : > { %1307 = vperm.xlu1 %3950, %v1304_v34   ;;  %v3859_v34 = vunpack.i.h.bf16 %v4494_v51  ;;  %v4542_v51 = vsel %vm389_vm7, %v724_v44, %v3844_v39 }
  0xc2   : > { %v1290_v12 = vrot.slane %v4542_v51, 4 }
  0xc3   : > { %v1055_v7 = vsel %vm381_vm3, %v1054_v48, %v3859_v34 }
  0xc4   : > { %v1056_v19 = vsel %vm383_vm4, %v1055_v7, %v3864_v55 }
 0x107   : > { %v4510_v17 = vpop.permute.xlu0 %3881  ;;  %v4514_v47 = vpop.permute.xlu1 %3886 }
 0x108   : > { %v3884_v3 = vunpack.i.h.bf16 %v4510_v17  ;;  %v3883_v60 = vunpack.i.l.bf16 %v4510_v17  ;;  %v3889_v27 = vunpack.i.h.bf16 %v4514_v47 }
 0x10b   : > { %v4516_v54 = vpop.permute.xlu0 %3896 }
 0x10c   : > { %v3898_v40 = vunpack.i.l.bf16 %v4516_v54 }
 0x10f   : > { %v3892_v38 = vpop.permute.xlu1 %3891  ;;  %v4522_v18 = vpop.permute.xlu0 %3901 }
 0x110   : > { %v3893_v32 = vunpack.i.l.bf16 %v3892_v38  ;;  %v3904_v55 = vunpack.i.h.bf16 %v4522_v18 }
 0x113   : > { %v4534_v49 = vpop.permute.xlu1 %3906  ;;  %v3912_v23 = vpop.permute.xlu0 %3911 }
 0x114   : > { %v3914_v8 = vunpack.i.h.bf16 %v3912_v23  ;;  %v3913_v61 = vunpack.i.l.bf16 %v3912_v23 }
 0x116   : > { %v611_v20 = vsel %vm377_vm1, %v4408_v28, %v3914_v8  ;;  %v378_v56 = vsel %vm377_vm1, %v4405_v24, %v3913_v61  ;;  %v3888_v28 = vunpack.i.l.bf16 %v4514_v47  ;;  %v3894_v24 = vunpack.i.h.bf16 %v3892_v38 }
 0x117   : > { %v4546_v50 = vpop.permute.xlu1 %1256  ;;  %v3917_v10 = vpop.permute.xlu0 %3916  ;;  %v380_v33 = vsel %vm379_vm2, %v378_v56, %v3883_v60  ;;  %v612_v37 = vsel %vm379_vm2, %v611_v20, %v3884_v3  ;;  %v3899_v47 = vunpack.i.h.bf16 %v4516_v54  ;;  %v3903_v8 = vunpack.i.l.bf16 %v4522_v18 }
 0x118   : > { %v3919_v63 = vunpack.i.h.bf16 %v3917_v10  ;;  %v3918_v62 = vunpack.i.l.bf16 %v3917_v10 }
 0x11a   : > { %v382_v22 = vsel %vm381_vm3, %v380_v33, %v3918_v62  ;;  %v613_v31 = vsel %vm381_vm3, %v612_v37, %v3919_v63  ;;  %v831_v62 = vsel %vm385_vm5, %v830_v14, %v3868_v13  ;;  %v3909_v14 = vunpack.i.h.bf16 %v4534_v49 }
 0x11b   : > { %v3932_v21 = vpop.permute.xlu1 %3931  ;;  %v3922_v26 = vpop.permute.xlu0 %3921  ;;  %v384_v53 = vsel %vm383_vm4, %v382_v22, %v3888_v28  ;;  %v832_v51 = vsel %vm387_vm6, %v831_v62, %v3873_v16 }
 0x11c   : > { %v3924_v29 = vunpack.i.h.bf16 %v3922_v26  ;;  %v3923_v30 = vunpack.i.l.bf16 %v3922_v26  ;;  %v3934_v44 = vunpack.i.h.bf16 %v3932_v21  ;;  %v3933_v46 = vunpack.i.l.bf16 %v3932_v21 }
 0x11e   : > { %v1160_v17 = vsel %vm377_vm1, %v4431_v58, %v3924_v29  ;;  %v946_v39 = vsel %vm377_vm1, %v4435_v5, %v3923_v30  ;;  %v614_v5 = vsel %vm383_vm4, %v613_v31, %v3889_v27  ;;  %v1057_v29 = vsel %vm385_vm5, %v1056_v19, %v3869_v52 }
 0x11f   : > { %v1161_v38 = vsel %vm379_vm2, %v1160_v17, %v3894_v24  ;;  %v947_v34 = vsel %vm379_vm2, %v946_v39, %v3893_v32  ;;  %v3937_v35 = vpop.permute.xlu1 %3936  ;;  %v3927_v43 = vpop.permute.xlu0 %3926  ;;  %v3908_v32 = vunpack.i.l.bf16 %v4534_v49  ;;  %v3879_v52 = vunpack.i.h.bf16 %v4508_v15 }
 0x120   : > { %v3929_v48 = vunpack.i.h.bf16 %v3927_v43  ;;  %v3928_v23 = vunpack.i.l.bf16 %v3927_v43  ;;  %v3938_v58 = vunpack.i.l.bf16 %v3937_v35  ;;  %v948_v2 = vsel %vm381_vm3, %v947_v34, %v3933_v46 }
 0x121   : > { %v1162_v7 = vsel %vm381_vm3, %v1161_v38, %v3934_v44  ;;  %v3939_v61 = vunpack.i.h.bf16 %v3937_v35  ;;  %v949_v26 = vsel %vm383_vm4, %v948_v2, %v3903_v8  ;;  %v3878_v19 = vunpack.i.l.bf16 %v4508_v15 }
 0x122   : > { %v386_v0 = vsel %vm385_vm5, %v384_v53, %v3928_v23  ;;  %v615_v54 = vsel %vm385_vm5, %v614_v5, %v3929_v48  ;;  %v1163_v27 = vsel %vm383_vm4, %v1162_v7, %v3904_v55  ;;  %v1058_v49 = vsel %vm387_vm6, %v1057_v29, %v3874_v59  ;;  %v1303_v53 = vld [vmem:[%s5606_s1] sm:$0xff] }
 0x123   : > { %v3942_v10 = vpop.permute.xlu1 %3941  ;;  %v1253_v20 = vpop.permute.xlu0 %1252  ;;  %v388_v56 = vsel %vm387_vm6, %v386_v0, %v3898_v40  ;;  %v616_v63 = vsel %vm387_vm6, %v615_v54, %v3899_v47  ;;  %v833_v35 = vsel %vm389_vm7, %v832_v51, %v3878_v19  ;;  %v1059_v43 = vsel %vm389_vm7, %v1058_v49, %v3879_v52 }
 0x124   : > { %v3944_v3 = vunpack.i.h.bf16 %v3942_v10  ;;  %v3943_v60 = vunpack.i.l.bf16 %v3942_v10  ;;  %v390_v21 = vsel %vm389_vm7, %v388_v56, %v3938_v58  ;;  %v617_v28 = vsel %vm389_vm7, %v616_v63, %v3939_v61 }
 0x125   : > { %v1299_v18 = vsel %vm1298_vm8, %v390_v21, %v1287_v11  ;;  %v1300_v13 = vsel %vm1298_vm8, %v617_v28, %v1290_v12  ;;  %v1279_v33 = vsel %vm377_vm1, %v4466_v25, %v1253_v20 }
 0x126   : > { %v950_v30 = vsel %vm385_vm5, %v949_v26, %v3943_v60  ;;  %v1164_v24 = vsel %vm385_vm5, %v1163_v27, %v3944_v3  ;;  %v3759_v11 = vpack.c.bf16 %v1300_v13, %v1299_v18  ;;  %v1280_v15 = vsel %vm379_vm2, %v1279_v33, %v4546_v50 }
 0x127   : > { %v3947_v37 = vpop.permute.xlu1 %3946  ;;  %v1261_v22 = vpop.permute.xlu0 %1260  ;;  %v951_v12 = vsel %vm387_vm6, %v950_v30, %v3908_v32  ;;  %v1165_v25 = vsel %vm387_vm6, %v1164_v24, %v3909_v14 }
 0x128   : > { %v3949_v31 = vunpack.i.h.bf16 %v3947_v37  ;;  %v3948_v17 = vunpack.i.l.bf16 %v3947_v37  ;;  %3760 = vmatpush3.bf16.msra.mxu0 %v3759_v11  ;;  %v1281_v4 = vsel %vm381_vm3, %v1280_v15, %v1261_v22 }
 0x129   : > { %3761 = vmatprep.subr.bf16.mxu0 %v5613_v1 }
 0x12a   : > { %v952_v39 = vsel %vm389_vm7, %v951_v12, %v3948_v17  ;;  %v1166_v47 = vsel %vm389_vm7, %v1165_v25, %v3949_v31 }
 0x12b   : > { %v1293_v40 = vrot.slane %v952_v39, 4  ;;  %v1296_v16 = vrot.slane %v1166_v47, 4  ;;  %v1265_v38 = vpop.permute.xlu1 %1264  ;;  %v1269_v59 = vpop.permute.xlu0 %1268 }
 0x12c   : > { %v1282_v34 = vsel %vm383_vm4, %v1281_v4, %v1265_v38 }
 0x12d   : > { %v1301_v44 = vsel %vm1298_vm8, %v833_v35, %v1293_v40  ;;  %v1302_v46 = vsel %vm1298_vm8, %v1059_v43, %v1296_v16  ;;  %v1283_v50 = vsel %vm385_vm5, %v1282_v34, %v1269_v59 }
 0x12e   : > { %v3762_v48 = vpack.c.bf16 %v1302_v46, %v1301_v44 }
 0x12f   : > { %v1273_v23 = vpop.permute.xlu1 %1272  ;;  %v1277_v58 = vpop.permute.xlu0 %1276 }
 0x130   : > { %v1284_v55 = vsel %vm387_vm6, %v1283_v50, %v1273_v23  ;;  %3763 = vmatpush3.bf16.msra.mxu0 %v3762_v48 }
 0x131   : > { %3727 = vmatprep.subr.mxu0 %v5615_v6  ;;  %v1285_v5 = vsel %vm389_vm7, %v1284_v55, %v1277_v58 }
 0x134   : > { %3728 = vmatpush3.msk.msra.mxu0 %vm1298_vm8, %v1285_v5 }
 0x135   : > { %3730 = vmatmul.mubr.msk.f32.vlgmr.msra.gmra.mrb[0].mxu0 %vm1310_vm9, %v1303_v53  ;;  %3753 = vmatprep.subr.mxu0 %v5615_v6 }
 0x136   : > { %3755 = vmatprep.mubr.msk.f32.mxu0 %vm4116_vm0, %v5615_v6 }
 0x140   : > { %v1308_v0 = vpop.permute.xlu1 %1307 }
 0x208   : > { %v1383_v54 = vpop.f32.mrb[0].mxu0 }
 0x209   : > { %v1384_v2 = vadd.f32 %v1383_v54, %v1308_v0  ;;  %v3731_v7 = vpop.f32.mrb[1].mxu0 }
 0x20b   : > { %v4634_v8 = vmax.f32 %v1384_v2, 0.0 }
 0x20d   : > { %1410 = vrot.lane.b32.xlu1 %v4634_v8, %s4118_s19  ;;  %1407 = vrot.lane.b32.xlu0 %v4634_v8, %s4119_s20 }
 0x211   : > { %1416 = vrot.lane.b32.xlu1 %v4634_v8, %s4120_s21  ;;  %1413 = vrot.lane.b32.xlu0 %v4634_v8, %s4121_s22 }
 0x215   : > { %1422 = vrot.lane.b32.xlu1 %v4634_v8, %s4122_s23  ;;  %1419 = vrot.lane.b32.xlu0 %v4634_v8, %s4123_s26 }
 0x219   : > { %1425 = vrot.lane.b32.xlu0 %v4634_v8, %s4124_s27 }
 0x21d   : > { %3491 = vrot.lane.b32.xlu0 %v4312_v45, %s4109_s9 }
 0x27f   : > { %v1411_v45 = vpop.permute.xlu1 %1410  ;;  %v1408_v61 = vpop.permute.xlu0 %1407 }
 0x280   : > { %v1428_v3 = vcombine.low %v4634_v8, %v1411_v45  ;;  %v1429_v32 = vcombine.high %v4634_v8, %v1411_v45 }
 0x282   : > { %v1436_v27 = vrot.slane %v1428_v3, %v4191_v9  ;;  %v1443_v51 = vrot.slane %v1429_v32, %v4191_v9 }
 0x283   : > { %v1417_v10 = vpop.permute.xlu1 %1416  ;;  %v1414_v20 = vpop.permute.xlu0 %1413 }
 0x284   : > { %v1444_v56 = vcombine.low %v1408_v61, %v1414_v20  ;;  %v1445_v29 = vcombine.high %v1408_v61, %v1414_v20 }
 0x286   : > { %v1452_v60 = vrot.slane %v1444_v56, %v4191_v9  ;;  %v1459_v11 = vrot.slane %v1445_v29, %v4191_v9 }
 0x287   : > { %v1423_v63 = vpop.permute.xlu1 %1422  ;;  %v1420_v62 = vpop.permute.xlu0 %1419 }
 0x288   : > { %v1460_v21 = vcombine.low %v1417_v10, %v1423_v63  ;;  %v1492_v30 = vcombine.low %v1436_v27, %v1452_v60  ;;  %v1461_v24 = vcombine.high %v1417_v10, %v1423_v63  ;;  %v1493_v52 = vcombine.high %v1436_v27, %v1452_v60 }
 0x289   : > { %v1508_v47 = vcombine.low %v1443_v51, %v1459_v11  ;;  %v1509_v59 = vcombine.high %v1443_v51, %v1459_v11 }
 0x28a   : > { %v1468_v13 = vrot.slane %v1460_v21, %v4191_v9  ;;  %v1475_v19 = vrot.slane %v1461_v24, %v4191_v9  ;;  %v1500_v31 = vrot.slane %v1492_v30, %v4237_v42  ;;  %v1507_v15 = vrot.slane %v1493_v52, %v4237_v42 }
 0x28b   : > { %v1426_v26 = vpop.permute.xlu0 %1425  ;;  %v1516_v34 = vrot.slane %v1508_v47, %v4237_v42  ;;  %v1523_v46 = vrot.slane %v1509_v59, %v4237_v42 }
 0x28c   : > { %v1476_v28 = vcombine.low %v1420_v62, %v1426_v26  ;;  %v1477_v18 = vcombine.high %v1420_v62, %v1426_v26 }
 0x28e   : > { %v1484_v14 = vrot.slane %v1476_v28, %v4191_v9  ;;  %v1491_v33 = vrot.slane %v1477_v18, %v4191_v9 }
 0x28f   : > { %v4695_v23 = vpop.permute.xlu0 %3491 }
 0x290   : > { %v1524_v37 = vcombine.low %v1468_v13, %v1484_v14  ;;  %v1525_v22 = vcombine.high %v1468_v13, %v1484_v14  ;;  %v1540_v49 = vcombine.low %v1475_v19, %v1491_v33  ;;  %v1541_v40 = vcombine.high %v1475_v19, %v1491_v33 }
 0x292   : > { %v1532_v17 = vrot.slane %v1524_v37, %v4237_v42  ;;  %v1539_v39 = vrot.slane %v1525_v22, %v4237_v42  ;;  %v1548_v38 = vrot.slane %v1540_v49, %v4237_v42  ;;  %v1555_v44 = vrot.slane %v1541_v40, %v4237_v42 }
 0x294   : > { %v1557_v12 = vcombine.high %v1500_v31, %v1532_v17  ;;  %v1556_v25 = vcombine.low %v1500_v31, %v1532_v17  ;;  %v1559_v16 = vcombine.high %v1507_v15, %v1539_v39  ;;  %v1558_v4 = vcombine.low %v1507_v15, %v1539_v39 }
 0x295   : > { %v1561_v35 = vcombine.high %v1516_v34, %v1548_v38  ;;  %v1560_v43 = vcombine.low %v1516_v34, %v1548_v38  ;;  %v1563_v48 = vcombine.high %v1523_v46, %v1555_v44  ;;  %v1562_v50 = vcombine.low %v1523_v46, %v1555_v44 }
 0x296   : > { %1574 = vrot.lane.b32.xlu0 %v1557_v12, %s4125_s28  ;;  %1572 = vrot.lane.b32.xlu1 %v1556_v25, %s4125_s28 }
 0x29a   : > { %1578 = vrot.lane.b32.xlu0 %v1559_v16, %s4125_s28  ;;  %1576 = vrot.lane.b32.xlu1 %v1558_v4, %s4125_s28 }
 0x29e   : > { %1582 = vrot.lane.b32.xlu0 %v1561_v35, %s4125_s28  ;;  %1580 = vrot.lane.b32.xlu1 %v1560_v43, %s4125_s28 }
 0x2a2   : > { %1586 = vrot.lane.b32.xlu0 %v1563_v48, %s4125_s28  ;;  %1584 = vrot.lane.b32.xlu1 %v1562_v50, %s4125_s28 }
 0x308   : > { %v1573_v55 = vpop.permute.xlu1 %1572  ;;  %v1575_v58 = vpop.permute.xlu0 %1574 }
 0x309   : > { %1597 = vst.msk [vmem:[#allocation2 + $0x1] sm:$0xff] %vm1596_vm12, %v1573_v55  ;;  %1598 = vst.msk [vmem:[#allocation2 + $0x11] sm:$0xff] %vm1596_vm12, %v1575_v58 }
 0x30c   : > { %v1577_v53 = vpop.permute.xlu1 %1576  ;;  %v1579_v5 = vpop.permute.xlu0 %1578 }
 0x30d   : > { %1599 = vst.msk [vmem:[#allocation2 + $0x21] sm:$0xff] %vm1596_vm12, %v1577_v53  ;;  %1600 = vst.msk [vmem:[#allocation2 + $0x31] sm:$0xff] %vm1596_vm12, %v1579_v5 }
 0x310   : > { %v1581_v0 = vpop.permute.xlu1 %1580  ;;  %v1583_v54 = vpop.permute.xlu0 %1582  ;;  %v4701_v2 = vld [vmem:[#allocation2] sm:$0xff]  ;;  %v4703_v7 = vld [vmem:[#allocation2 + $0x10] sm:$0xff] }
 0x311   : > { %1601 = vst.msk [vmem:[#allocation2 + $0x41] sm:$0xff] %vm1596_vm12, %v1581_v0  ;;  %1602 = vst.msk [vmem:[#allocation2 + $0x51] sm:$0xff] %vm1596_vm12, %v1583_v54  ;;  %1792 = vrot.lane.b32.xlu1 %v4701_v2, %s4106_s30  ;;  %1794 = vrot.lane.b32.xlu0 %v4703_v7, %s4106_s30  ;;  %v4729_v3 = vld [vmem:[#allocation2 + $0x1] sm:$0xff]  ;;  %v4731_v60 = vld [vmem:[#allocation2 + $0x11] sm:$0xff] }
 0x314   : > { %v1585_v8 = vpop.permute.xlu1 %1584  ;;  %v1587_v45 = vpop.permute.xlu0 %1586  ;;  %v4711_v61 = vld [vmem:[#allocation2 + $0x20] sm:$0xff]  ;;  %v4713_v10 = vld [vmem:[#allocation2 + $0x30] sm:$0xff] }
 0x315   : > { %v4715_v20 = vld [vmem:[#allocation2 + $0x21] sm:$0xff]  ;;  %1603 = vst.msk [vmem:[#allocation2 + $0x61] sm:$0xff] %vm1596_vm12, %v1585_v8  ;;  %1604 = vst.msk [vmem:[#allocation2 + $0x71] sm:$0xff] %vm1596_vm12, %v1587_v45  ;;  %1796 = vrot.lane.b32.xlu1 %v4711_v61, %s4106_s30  ;;  %v1613_v56 = vcombine.low %v4701_v2, %v4711_v61  ;;  %v1614_v63 = vcombine.high %v4701_v2, %v4711_v61  ;;  %1798 = vrot.lane.b32.xlu0 %v4713_v10, %s4106_s30  ;;  %v4733_v21 = vld [vmem:[#allocation2 + $0x31] sm:$0xff] }
 0x316   : > { %v1629_v62 = vcombine.low %v4703_v7, %v4713_v10  ;;  %v1630_v26 = vcombine.high %v4703_v7, %v4713_v10  ;;  %v2190_v27 = vcombine.low %v4729_v3, %v4715_v20  ;;  %v2191_v28 = vcombine.high %v4729_v3, %v4715_v20 }
 0x317   : > { %v2206_v18 = vcombine.low %v4731_v60, %v4733_v21  ;;  %v4744_v29 = vrot.slane %v1613_v56, %v4191_v9  ;;  %v4747_v30 = vrot.slane %v1614_v63, %v4191_v9  ;;  %v2207_v13 = vcombine.high %v4731_v60, %v4733_v21 }
 0x318   : > { %v4750_v24 = vrot.slane %v1629_v62, %v4191_v9  ;;  %v4755_v14 = vrot.slane %v1630_v26, %v4191_v9  ;;  %v4757_v32 = vld [vmem:[#allocation2 + $0x40] sm:$0xff]  ;;  %v4759_v33 = vld [vmem:[#allocation2 + $0x50] sm:$0xff]  ;;  %v4762_v37 = vrot.slane %v2190_v27, %v4191_v9  ;;  %v4765_v22 = vrot.slane %v2191_v28, %v4191_v9 }
 0x319   : > { %v4768_v11 = vrot.slane %v2206_v18, %v4191_v9  ;;  %1800 = vrot.lane.b32.xlu1 %v4757_v32, %s4106_s30  ;;  %1802 = vrot.lane.b32.xlu0 %v4759_v33, %s4106_s30  ;;  %v4779_v31 = vrot.slane %v2207_v13, %v4191_v9  ;;  %v4809_v59 = vld [vmem:[#allocation2 + $0x41] sm:$0xff]  ;;  %v4811_v34 = vld [vmem:[#allocation2 + $0x51] sm:$0xff] }
 0x31a   : > { %v1677_v52 = vcombine.low %v4744_v29, %v4750_v24  ;;  %v1678_v19 = vcombine.high %v4744_v29, %v4750_v24  ;;  %v1693_v17 = vcombine.low %v4747_v30, %v4755_v14  ;;  %v1694_v51 = vcombine.high %v4747_v30, %v4755_v14  ;;  %v4839_v62 = vld [vmem:[#allocation2 + $0x22] sm:$0xff] }
 0x31b   : > { %v2254_v49 = vcombine.low %v4762_v37, %v4768_v11  ;;  %v2255_v12 = vcombine.high %v4762_v37, %v4768_v11  ;;  %v2270_v25 = vcombine.low %v4765_v22, %v4779_v31  ;;  %v2271_v39 = vcombine.high %v4765_v22, %v4779_v31 }
 0x31c   : > { %v4793_v47 = vld [vmem:[#allocation2 + $0x60] sm:$0xff]  ;;  %v4795_v15 = vld [vmem:[#allocation2 + $0x70] sm:$0xff] }
 0x31d   : > { %v4797_v40 = vld [vmem:[#allocation2 + $0x61] sm:$0xff]  ;;  %1804 = vrot.lane.b32.xlu1 %v4793_v47, %s4106_s30  ;;  %v1645_v16 = vcombine.low %v4757_v32, %v4793_v47  ;;  %v1646_v4 = vcombine.high %v4757_v32, %v4793_v47  ;;  %1806 = vrot.lane.b32.xlu0 %v4795_v15, %s4106_s30  ;;  %v1661_v38 = vcombine.low %v4759_v33, %v4795_v15  ;;  %v4813_v35 = vld [vmem:[#allocation2 + $0x71] sm:$0xff] }
 0x31e   : > { %v1662_v43 = vcombine.high %v4759_v33, %v4795_v15  ;;  %v2222_v44 = vcombine.low %v4809_v59, %v4797_v40  ;;  %v2223_v46 = vcombine.high %v4809_v59, %v4797_v40  ;;  %v2238_v48 = vcombine.low %v4811_v34, %v4813_v35  ;;  %v4841_v26 = vld [vmem:[#allocation2 + $0x62] sm:$0xff] }
 0x31f   : > { %v1653_v50 = vrot.slane %v1645_v16, %v4191_v9  ;;  %v1660_v55 = vrot.slane %v1646_v4, %v4191_v9  ;;  %v1669_v58 = vrot.slane %v1661_v38, %v4191_v9  ;;  %v2239_v53 = vcombine.high %v4811_v34, %v4813_v35  ;;  %v4843_v16 = vld [vmem:[#allocation2 + $0x32] sm:$0xff] }
 0x320   : > { %v1676_v5 = vrot.slane %v1662_v43, %v4191_v9  ;;  %v2230_v0 = vrot.slane %v2222_v44, %v4191_v9  ;;  %v4831_v54 = vrot.slane %v2223_v46, %v4191_v9  ;;  %v2246_v8 = vrot.slane %v2238_v48, %v4191_v9  ;;  %v4845_v4 = vld [vmem:[#allocation2 + $0x72] sm:$0xff]  ;;  %v4849_v43 = vld [vmem:[#allocation2 + $0x2] sm:$0xff] }
 0x321   : > { %v1709_v45 = vcombine.low %v1653_v50, %v1669_v58  ;;  %v1710_v56 = vcombine.high %v1653_v50, %v1669_v58  ;;  %1987 = vrot.lane.b32.xlu1 %v4701_v2, %s4126_s15  ;;  %1989 = vrot.lane.b32.xlu0 %v4703_v7, %s4126_s15  ;;  %v2253_v63 = vrot.slane %v2239_v53, %v4191_v9  ;;  %v4851_v7 = vld [vmem:[#allocation2 + $0x42] sm:$0xff]  ;;  %v4853_v44 = vld [vmem:[#allocation2 + $0x12] sm:$0xff] }
 0x322   : > { %v1725_v27 = vcombine.low %v1660_v55, %v1676_v5  ;;  %v1726_v28 = vcombine.high %v1660_v55, %v1676_v5  ;;  %v2286_v18 = vcombine.low %v2230_v0, %v2246_v8  ;;  %v2287_v13 = vcombine.high %v2230_v0, %v2246_v8  ;;  %v4857_v48 = vld [vmem:[#allocation2 + $0x52] sm:$0xff] }
 0x323   : > { %v2302_v38 = vcombine.low %v4831_v54, %v2253_v63  ;;  %v2303_v2 = vcombine.high %v4831_v54, %v2253_v63  ;;  %v2767_v46 = vcombine.low %v4849_v43, %v4839_v62  ;;  %v2799_v50 = vcombine.low %v4851_v7, %v4841_v26 }
 0x324   : > { %v2783_v55 = vcombine.low %v4853_v44, %v4843_v16  ;;  %v2815_v58 = vcombine.low %v4857_v48, %v4845_v4  ;;  %v4870_v53 = vrot.slane %v1710_v56, %v4237_v42  ;;  %v4873_v5 = vrot.slane %v1678_v19, %v4237_v42 }
 0x325   : > { %1991 = vrot.lane.b32.xlu1 %v4711_v61, %s4126_s15  ;;  %1993 = vrot.lane.b32.xlu0 %v4713_v10, %s4126_s15  ;;  %v4876_v0 = vrot.slane %v2799_v50, %v4191_v9  ;;  %v4885_v10 = vrot.slane %v1677_v52, %v4237_v42  ;;  %v4890_v8 = vrot.slane %v1709_v45, %v4237_v42 }
 0x326   : > { %v4879_v61 = vrot.slane %v2815_v58, %v4191_v9  ;;  %v1743_v54 = vcombine.low %v4873_v5, %v4870_v53  ;;  %v4893_v19 = vrot.slane %v1693_v17, %v4237_v42  ;;  %v4896_v56 = vrot.slane %v1725_v27, %v4237_v42 }
 0x327   : > { %v4903_v29 = vrot.slane %v2767_v46, %v4191_v9  ;;  %v4906_v24 = vrot.slane %v2783_v55, %v4191_v9  ;;  %v4922_v63 = vrot.slane %v1694_v51, %v4237_v42  ;;  %v4925_v27 = vrot.slane %v1726_v28, %v4237_v42 }
 0x328   : > { %v2863_v52 = vcombine.low %v4876_v0, %v4879_v61  ;;  %v4931_v46 = vrot.slane %v2254_v49, %v4237_v42  ;;  %v4934_v50 = vrot.slane %v2286_v18, %v4237_v42  ;;  %v4940_v55 = vrot.slane %v2270_v25, %v4237_v42 }
 0x329   : > { %1995 = vrot.lane.b32.xlu1 %v4757_v32, %s4126_s15  ;;  %1997 = vrot.lane.b32.xlu0 %v4759_v33, %s4126_s15  ;;  %v4943_v30 = vrot.slane %v2302_v38, %v4237_v42  ;;  %v4949_v14 = vrot.slane %v2255_v12, %v4237_v42  ;;  %v4960_v25 = vrot.slane %v2287_v13, %v4237_v42 }
 0x32a   : > { %v2831_v37 = vcombine.low %v4903_v29, %v4906_v24  ;;  %v4978_v18 = vrot.slane %v2271_v39, %v4237_v42  ;;  %v4981_v13 = vrot.slane %v2303_v2, %v4237_v42  ;;  %v4984_v38 = vrot.slane %v2863_v52, %v4237_v42 }
 0x32c   : > { %v4995_v31 = vrot.slane %v2831_v37, %v4237_v42 }
 0x32d   : > { %1999 = vrot.lane.b32.xlu1 %v4793_v47, %s4126_s15  ;;  %2001 = vrot.lane.b32.xlu0 %v4795_v15, %s4126_s15 }
 0x331   : > { %2369 = vrot.lane.b32.xlu1 %v4729_v3, %s4106_s30  ;;  %2371 = vrot.lane.b32.xlu0 %v4731_v60, %s4106_s30 }
 0x335   : > { %2373 = vrot.lane.b32.xlu1 %v4715_v20, %s4106_s30  ;;  %2375 = vrot.lane.b32.xlu0 %v4733_v21, %s4106_s30 }
 0x339   : > { %2377 = vrot.lane.b32.xlu1 %v4809_v59, %s4106_s30  ;;  %2379 = vrot.lane.b32.xlu0 %v4811_v34, %s4106_s30 }
 0x33d   : > { %2381 = vrot.lane.b32.xlu1 %v4797_v40, %s4106_s30  ;;  %2383 = vrot.lane.b32.xlu0 %v4813_v35, %s4106_s30 }
 0x341   : > { %2564 = vrot.lane.b32.xlu1 %v4729_v3, %s4126_s15  ;;  %2566 = vrot.lane.b32.xlu0 %v4731_v60, %s4126_s15  ;;  %v4093_v3 = vld [vmem:[%s4181_s29 + $0xe0] sm:$0xff] }
 0x345   : > { %2568 = vrot.lane.b32.xlu1 %v4715_v20, %s4126_s15  ;;  %2570 = vrot.lane.b32.xlu0 %v4733_v21, %s4126_s15  ;;  %v4092_v20 = vld [vmem:[%s4181_s29 + $0xc0] sm:$0xff]  ;;  %v4094_v21 = vld [vmem:[%s4181_s29 + $0xd0] sm:$0xff] }
 0x346   : > { %v3423_v60 = vcombine.high %v4092_v20, %v4093_v3 }
 0x349   : > { %2572 = vrot.lane.b32.xlu1 %v4809_v59, %s4126_s15  ;;  %2574 = vrot.lane.b32.xlu0 %v4811_v34, %s4126_s15  ;;  %v5060_v34 = vrot.slane %v3423_v60, %v4191_v9 }
 0x34b   : > { %5623 = vst [vmem:[#allocation4_spill] sm:$0xff] %v5060_v34 }
 0x34d   : > { %2576 = vrot.lane.b32.xlu1 %v4797_v40, %s4126_s15  ;;  %2578 = vrot.lane.b32.xlu0 %v4813_v35, %s4126_s15  ;;  %v4095_v40 = vld [vmem:[%s4181_s29 + $0xf0] sm:$0xff] }
 0x34e   : > { %v3439_v59 = vcombine.high %v4094_v21, %v4095_v40 }
 0x350   : > { %v5063_v35 = vrot.slane %v3439_v59, %v4191_v9 }
 0x351   : > { %2946 = vrot.lane.b32.xlu1 %v4849_v43, %s4106_s30  ;;  %2948 = vrot.lane.b32.xlu0 %v4853_v44, %s4106_s30 }
 0x352   : > { %5624 = vst [vmem:[#allocation5_spill] sm:$0xff] %v5063_v35  ;;  %v3470_v37 = vcombine.low %v5060_v34, %v5063_v35 }
 0x354   : > { %v5076_v20 = vrot.slane %v3470_v37, %v4237_v42 }
 0x355   : > { %2950 = vrot.lane.b32.xlu1 %v4839_v62, %s4106_s30  ;;  %2952 = vrot.lane.b32.xlu0 %v4843_v16, %s4106_s30 }
 0x356   : > { %5625 = vst [vmem:[#allocation6_spill] sm:$0xff] %v5076_v20 }
 0x359   : > { %2954 = vrot.lane.b32.xlu1 %v4851_v7, %s4106_s30  ;;  %2956 = vrot.lane.b32.xlu0 %v4857_v48, %s4106_s30 }
 0x35d   : > { %2958 = vrot.lane.b32.xlu1 %v4841_v26, %s4106_s30  ;;  %2960 = vrot.lane.b32.xlu0 %v4845_v4, %s4106_s30 }
 0x361   : > { %3141 = vrot.lane.b32.xlu1 %v4849_v43, %s4126_s15  ;;  %3143 = vrot.lane.b32.xlu0 %v4853_v44, %s4126_s15 }
 0x365   : > { %3145 = vrot.lane.b32.xlu1 %v4839_v62, %s4126_s15  ;;  %3147 = vrot.lane.b32.xlu0 %v4843_v16, %s4126_s15 }
 0x369   : > { %3149 = vrot.lane.b32.xlu1 %v4851_v7, %s4126_s15  ;;  %3151 = vrot.lane.b32.xlu0 %v4857_v48, %s4126_s15 }
 0x36d   : > { %3153 = vrot.lane.b32.xlu1 %v4841_v26, %s4126_s15  ;;  %3155 = vrot.lane.b32.xlu0 %v4845_v4, %s4126_s15 }
 0x371   : > { %3495 = vrot.lane.b32.xlu0 %v4304_v41, %s4108_s8  ;;  %3503 = vrot.lane.b32.xlu1 %v5076_v20, %s4112_s12 }
 0x375   : > { %3499 = vrot.lane.b32.xlu0 %v4329_v57, %s4110_s10 }
 0x383   : > { %v1793_v3 = vpop.permute.xlu1 %1792  ;;  %v1795_v60 = vpop.permute.xlu0 %1794 }
 0x387   : > { %v1797_v21 = vpop.permute.xlu1 %1796  ;;  %v1799_v40 = vpop.permute.xlu0 %1798 }
 0x388   : > { %v1816_v59 = vcombine.low %v1793_v3, %v1797_v21  ;;  %v1832_v52 = vcombine.low %v1795_v60, %v1799_v40  ;;  %v1817_v2 = vcombine.high %v1793_v3, %v1797_v21  ;;  %v1833_v1 = vcombine.high %v1795_v60, %v1799_v40 }
 0x38a   : > { %v1824_v6 = vrot.slane %v1816_v59, %v4191_v9  ;;  %v1840_v41 = vrot.slane %v1832_v52, %v4191_v9  ;;  %v1831_v22 = vrot.slane %v1817_v2, %v4191_v9  ;;  %v1847_v58 = vrot.slane %v1833_v1, %v4191_v9 }
 0x38b   : > { %v1801_v39 = vpop.permute.xlu1 %1800  ;;  %v1803_v37 = vpop.permute.xlu0 %1802 }
 0x38c   : > { %v1880_v49 = vcombine.low %v1824_v6, %v1840_v41  ;;  %v1881_v52 = vcombine.high %v1824_v6, %v1840_v41  ;;  %v1896_v51 = vcombine.low %v1831_v22, %v1847_v58 }
 0x38f   : > { %v1805_v47 = vpop.permute.xlu1 %1804  ;;  %v1807_v57 = vpop.permute.xlu0 %1806 }
 0x390   : > { %v1848_v28 = vcombine.low %v1801_v39, %v1805_v47  ;;  %v1849_v15 = vcombine.high %v1801_v39, %v1805_v47  ;;  %v1864_v12 = vcombine.low %v1803_v37, %v1807_v57  ;;  %v1865_v11 = vcombine.high %v1803_v37, %v1807_v57 }
 0x391   : > { %v5093_v47 = vrot.slane %v1880_v49, %v4237_v42  ;;  %v1904_v37 = vrot.slane %v1896_v51, %v4237_v42  ;;  %v5627_v51 = vcombine.high %v4885_v10, %v4890_v8 }
 0x392   : > { %v1856_v3 = vrot.slane %v1848_v28, %v4191_v9  ;;  %v1863_v60 = vrot.slane %v1849_v15, %v4191_v9  ;;  %v1872_v21 = vrot.slane %v1864_v12, %v4191_v9  ;;  %v1879_v40 = vrot.slane %v1865_v11, %v4191_v9 }
 0x393   : > { %v1988_v59 = vpop.permute.xlu1 %1987  ;;  %v1990_v2 = vpop.permute.xlu0 %1989  ;;  %v1895_v15 = vrot.slane %v1881_v52, %v4237_v42 }
 0x394   : > { %v1912_v1 = vcombine.low %v1856_v3, %v1872_v21  ;;  %v1913_v33 = vcombine.high %v1856_v3, %v1872_v21  ;;  %v1928_v32 = vcombine.low %v1863_v60, %v1879_v40  ;;  %v1929_v45 = vcombine.high %v1863_v60, %v1879_v40 }
 0x395   : > { %v5628_v40 = vcombine.low %v4893_v19, %v4896_v56 }
 0x396   : > { %v5096_v39 = vrot.slane %v1912_v1, %v4237_v42  ;;  %v1927_v28 = vrot.slane %v1913_v33, %v4237_v42  ;;  %v1936_v12 = vrot.slane %v1928_v32, %v4237_v42  ;;  %v1897_v1 = vcombine.high %v1831_v22, %v1847_v58 }
 0x397   : > { %v1992_v11 = vpop.permute.xlu1 %1991  ;;  %v1994_v6 = vpop.permute.xlu0 %1993 }
 0x398   : > { %5626 = vst [vmem:[#allocation7_spill] sm:$0xff] %v5096_v39  ;;  %v2011_v57 = vcombine.low %v1988_v59, %v1992_v11  ;;  %v2027_v3 = vcombine.low %v1990_v2, %v1994_v6  ;;  %v1946_v49 = vcombine.low %v1895_v15, %v1927_v28  ;;  %v1945_v21 = vcombine.high %v5093_v47, %v5096_v39 }
 0x399   : > { %v1948_v20 = vcombine.low %v1904_v37, %v1936_v12  ;;  %v1947_v41 = vcombine.high %v1895_v15, %v1927_v28  ;;  %v2012_v34 = vcombine.high %v1988_v59, %v1992_v11  ;;  %v2028_v36 = vcombine.high %v1990_v2, %v1994_v6 }
 0x39a   : > { %v3956_v32 = vpack.i.bf16 %v1946_v49, %v1743_v54  ;;  %v3951_v52 = vpack.i.bf16 %v1945_v21, %v5627_v51  ;;  %v2019_v35 = vrot.slane %v2011_v57, %v4191_v9  ;;  %v2035_v39 = vrot.slane %v2027_v3, %v4191_v9 }
 0x39b   : > { %v1996_v33 = vpop.permute.xlu1 %1995  ;;  %v1998_v17 = vpop.permute.xlu0 %1997  ;;  %v1911_v58 = vrot.slane %v1897_v1, %v4237_v42  ;;  %v1943_v54 = vrot.slane %v1929_v45, %v4237_v42  ;;  %v3966_v28 = vpack.i.bf16 %v1948_v20, %v5628_v40  ;;  %v5629_v59 = vcombine.high %v4873_v5, %v4870_v53 }
 0x39c   : > { %3957 = vrot.lane.b32.xlu0 %v3956_v32, %s4108_s8  ;;  %3952 = vrot.lane.b32.xlu1 %v3951_v52, %s4109_s9  ;;  %v1949_v15 = vcombine.high %v1904_v37, %v1936_v12  ;;  %v5125_v49 = vrot.slane %v2012_v34, %v4191_v9  ;;  %v5128_v45 = vrot.slane %v2028_v36, %v4191_v9 }
 0x39d   : > { %v3961_v2 = vpack.i.bf16 %v1947_v41, %v5629_v59  ;;  %v2075_v21 = vcombine.low %v2019_v35, %v2035_v39  ;;  %v5630_v36 = vcombine.high %v4893_v19, %v4896_v56  ;;  %v1950_v41 = vcombine.low %v1911_v58, %v1943_v54 }
 0x39e   : > { %v2076_v51 = vcombine.high %v2019_v35, %v2035_v39  ;;  %v2091_v52 = vcombine.low %v5125_v49, %v5128_v45  ;;  %v5631_v35 = vcombine.low %v4922_v63, %v4925_v27  ;;  %v1951_v59 = vcombine.high %v1911_v58, %v1943_v54 }
 0x39f   : > { %v2000_v22 = vpop.permute.xlu1 %1999  ;;  %v2002_v60 = vpop.permute.xlu0 %2001  ;;  %v3971_v37 = vpack.i.bf16 %v1949_v15, %v5630_v36  ;;  %v5632_v54 = vcombine.high %v4922_v63, %v4925_v27  ;;  %v5634_v27 = vcombine.low %v4940_v55, %v4943_v30 }
 0x3a0   : > { %v2043_v11 = vcombine.low %v1996_v33, %v2000_v22  ;;  %v2044_v6 = vcombine.high %v1996_v33, %v2000_v22  ;;  %v2059_v57 = vcombine.low %v1998_v17, %v2002_v60  ;;  %v2060_v3 = vcombine.high %v1998_v17, %v2002_v60  ;;  %3967 = vrot.lane.b32.xlu0 %v3966_v28, %s4112_s12 }
 0x3a1   : > { %3962 = vrot.lane.b32.xlu1 %v3961_v2, %s4110_s10  ;;  %v5147_v22 = vrot.slane %v2075_v21, %v4237_v42  ;;  %v3981_v39 = vpack.i.bf16 %v1950_v41, %v5631_v35  ;;  %v2090_v15 = vrot.slane %v2076_v51, %v4237_v42  ;;  %v5635_v35 = vcombine.low %v4949_v14, %v4960_v25 }
 0x3a2   : > { %v2051_v20 = vrot.slane %v2043_v11, %v4191_v9  ;;  %v2058_v53 = vrot.slane %v2044_v6, %v4191_v9  ;;  %v2067_v5 = vrot.slane %v2059_v57, %v4191_v9  ;;  %v2074_v12 = vrot.slane %v2060_v3, %v4191_v9 }
 0x3a3   : > { %v5136_v17 = vpop.permute.xlu1 %2369  ;;  %v5138_v34 = vpop.permute.xlu0 %2371  ;;  %v2099_v11 = vrot.slane %v2091_v52, %v4237_v42 }
 0x3a4   : > { %v2107_v1 = vcombine.low %v2051_v20, %v2067_v5  ;;  %v2108_v33 = vcombine.high %v2051_v20, %v2067_v5  ;;  %v2123_v32 = vcombine.low %v2058_v53, %v2074_v12  ;;  %v3991_v20 = vpack.i.bf16 %v1951_v59, %v5632_v54 }
 0x3a5   : > { %3972 = vrot.lane.b32.xlu1 %v3971_v37, %s4113_s13  ;;  %v5633_v5 = vcombine.high %v4931_v46, %v4934_v50 }
 0x3a6   : > { %v5150_v60 = vrot.slane %v2107_v1, %v4237_v42  ;;  %v2122_v40 = vrot.slane %v2108_v33, %v4237_v42  ;;  %v2131_v19 = vrot.slane %v2123_v32, %v4237_v42  ;;  %v2124_v1 = vcombine.high %v2058_v53, %v2074_v12 }
 0x3a7   : > { %v5154_v56 = vpop.permute.xlu1 %2373  ;;  %v5156_v28 = vpop.permute.xlu0 %2375  ;;  %v2092_v53 = vcombine.high %v5125_v49, %v5128_v45  ;;  %v5636_v49 = vcombine.high %v4949_v14, %v4960_v25  ;;  %v5637_v25 = vcombine.high %v4940_v55, %v4943_v30 }
 0x3a8   : > { %v2140_v6 = vcombine.high %v5147_v22, %v5150_v60  ;;  %v2393_v57 = vcombine.low %v5136_v17, %v5154_v56  ;;  %v2409_v3 = vcombine.low %v5138_v34, %v5156_v28  ;;  %v2143_v37 = vcombine.low %v2099_v11, %v2131_v19 }
 0x3a9   : > { %3982 = vrot.lane.b32.xlu1 %v3981_v39, %s4111_s11  ;;  %v2141_v41 = vcombine.low %v2090_v15, %v2122_v40  ;;  %v2142_v59 = vcombine.high %v2090_v15, %v2122_v40 }
 0x3aa   : > { %v3976_v36 = vpack.i.bf16 %v5633_v5, %v2140_v6  ;;  %v5181_v33 = vrot.slane %v2393_v57, %v4191_v9  ;;  %v5184_v32 = vrot.slane %v2409_v3, %v4191_v9  ;;  %v4001_v52 = vpack.i.bf16 %v5634_v27, %v2143_v37 }
 0x3ab   : > { %v2378_v21 = vpop.permute.xlu1 %2377  ;;  %v2380_v58 = vpop.permute.xlu0 %2379  ;;  %v3986_v39 = vpack.i.bf16 %v5635_v35, %v2141_v41  ;;  %v2138_v57 = vrot.slane %v2124_v1, %v4237_v42  ;;  %v3996_v45 = vpack.i.bf16 %v5636_v49, %v2142_v59  ;;  %v2144_v5 = vcombine.high %v2099_v11, %v2131_v19 }
 0x3ac   : > { %3977 = vrot.lane.b32.xlu0 %v3976_v36, %s4109_s9  ;;  %v2457_v3 = vcombine.low %v5181_v33, %v5184_v32  ;;  %v2106_v36 = vrot.slane %v2092_v53, %v4237_v42  ;;  %v2394_v59 = vcombine.high %v5136_v17, %v5154_v56  ;;  %v2410_v53 = vcombine.high %v5138_v34, %v5156_v28 }
 0x3ad   : > { %3992 = vrot.lane.b32.xlu1 %v3991_v20, %s4114_s14  ;;  %v4006_v19 = vpack.i.bf16 %v5637_v25, %v2144_v5  ;;  %v2768_v25 = vcombine.high %v4849_v43, %v4839_v62 }
 0x3ae   : > { %v5213_v41 = vrot.slane %v2457_v3, %v4237_v42  ;;  %v2145_v27 = vcombine.low %v2106_v36, %v2138_v57  ;;  %v5238_v34 = vrot.slane %v2394_v59, %v4191_v9  ;;  %v5241_v28 = vrot.slane %v2410_v53, %v4191_v9 }
 0x3af   : > { %v2382_v51 = vpop.permute.xlu1 %2381  ;;  %v2384_v63 = vpop.permute.xlu0 %2383 }
 0x3b0   : > { %v2425_v12 = vcombine.low %v2378_v21, %v2382_v51  ;;  %v2441_v6 = vcombine.low %v2380_v58, %v2384_v63  ;;  %3987 = vrot.lane.b32.xlu0 %v3986_v39, %s4108_s8  ;;  %v2442_v35 = vcombine.high %v2380_v58, %v2384_v63  ;;  %v2473_v59 = vcombine.low %v5238_v34, %v5241_v28 }
 0x3b1   : > { %4002 = vrot.lane.b32.xlu1 %v4001_v52, %s4112_s12  ;;  %v2426_v52 = vcombine.high %v2378_v21, %v2382_v51  ;;  %v5638_v21 = vcombine.low %v4978_v18, %v4981_v13  ;;  %v2146_v51 = vcombine.high %v2106_v36, %v2138_v57 }
 0x3b2   : > { %v5200_v54 = vrot.slane %v2425_v12, %v4191_v9  ;;  %v5203_v20 = vrot.slane %v2441_v6, %v4191_v9  ;;  %v5235_v30 = vrot.slane %v2442_v35, %v4191_v9 }
 0x3b3   : > { %v2565_v40 = vpop.permute.xlu1 %2564  ;;  %v2567_v15 = vpop.permute.xlu0 %2566  ;;  %v4016_v58 = vpack.i.bf16 %v5638_v21, %v2145_v27  ;;  %v5232_v55 = vrot.slane %v2426_v52, %v4191_v9 }
 0x3b4   : > { %v2489_v37 = vcombine.low %v5200_v54, %v5203_v20  ;;  %3997 = vrot.lane.b32.xlu0 %v3996_v45, %s4110_s10  ;;  %v2490_v62 = vcombine.high %v5200_v54, %v5203_v20 }
 0x3b5   : > { %v2505_v45 = vcombine.low %v5232_v55, %v5235_v30 }
 0x3b6   : > { %v5216_v1 = vrot.slane %v2489_v37, %v4237_v42  ;;  %v5639_v37 = vcombine.high %v4978_v18, %v4981_v13 }
 0x3b7   : > { %v2569_v39 = vpop.permute.xlu1 %2568  ;;  %v2571_v14 = vpop.permute.xlu0 %2570  ;;  %v5281_v21 = vrot.slane %v2505_v45, %v4237_v42 }
 0x3b8   : > { %v2588_v12 = vcombine.low %v2565_v40, %v2569_v39  ;;  %v2604_v6 = vcombine.low %v2567_v15, %v2571_v14  ;;  %4007 = vrot.lane.b32.xlu0 %v4006_v19, %s4113_s13  ;;  %v2589_v63 = vcombine.high %v2565_v40, %v2569_v39  ;;  %v2605_v17 = vcombine.high %v2567_v15, %v2571_v14 }
 0x3b9   : > { %v4026_v27 = vpack.i.bf16 %v5639_v37, %v2146_v51  ;;  %v2784_v19 = vcombine.high %v4853_v44, %v4843_v16  ;;  %v2458_v37 = vcombine.high %v5181_v33, %v5184_v32  ;;  %v2522_v32 = vcombine.high %v5213_v41, %v5216_v1 }
 0x3ba   : > { %v2596_v49 = vrot.slane %v2588_v12, %v4191_v9  ;;  %v2612_v57 = vrot.slane %v2604_v6, %v4191_v9  ;;  %v5249_v40 = vrot.slane %v2589_v63, %v4191_v9  ;;  %v5252_v15 = vrot.slane %v2605_v17, %v4191_v9 }
 0x3bb   : > { %v2573_v56 = vpop.permute.xlu1 %2572  ;;  %v2575_v3 = vpop.permute.xlu0 %2574  ;;  %v5286_v17 = vrot.slane %v2768_v25, %v4191_v9  ;;  %v5289_v54 = vrot.slane %v2784_v19, %v4191_v9  ;;  %v2472_v19 = vrot.slane %v2458_v37, %v4237_v42 }
 0x3bc   : > { %4017 = vrot.lane.b32.xlu0 %v4016_v58, %s4111_s11  ;;  %v2652_v53 = vcombine.low %v2596_v49, %v2612_v57  ;;  %v2668_v16 = vcombine.low %v5249_v40, %v5252_v15  ;;  %v2653_v20 = vcombine.high %v2596_v49, %v2612_v57 }
 0x3be   : > { %v5308_v49 = vrot.slane %v2668_v16, %v4237_v42  ;;  %v2832_v16 = vcombine.high %v4903_v29, %v4906_v24 }
 0x3bf   : > { %v2577_v5 = vpop.permute.xlu1 %2576  ;;  %v2579_v36 = vpop.permute.xlu0 %2578 }
 0x3c0   : > { %v2620_v52 = vcombine.low %v2573_v56, %v2577_v5  ;;  %v2621_v35 = vcombine.high %v2573_v56, %v2577_v5  ;;  %v2636_v39 = vcombine.low %v2575_v3, %v2579_v36  ;;  %v2637_v14 = vcombine.high %v2575_v3, %v2579_v36  ;;  %4027 = vrot.lane.b32.xlu0 %v4026_v27, %s4114_s14 }
 0x3c1   : > { %v5292_v56 = vrot.slane %v2473_v59, %v4237_v42  ;;  %v5295_v3 = vrot.slane %v2652_v53, %v4237_v42  ;;  %v2800_v36 = vcombine.high %v4851_v7, %v4841_v26  ;;  %v2667_v7 = vrot.slane %v2653_v20, %v4237_v42 }
 0x3c2   : > { %v2628_v12 = vrot.slane %v2620_v52, %v4191_v9  ;;  %v5266_v18 = vrot.slane %v2621_v35, %v4191_v9  ;;  %v2644_v13 = vrot.slane %v2636_v39, %v4191_v9  ;;  %v5270_v6 = vrot.slane %v2637_v14, %v4191_v9 }
 0x3c3   : > { %v5276_v43 = vpop.permute.xlu1 %2946  ;;  %v5278_v44 = vpop.permute.xlu0 %2948  ;;  %v2816_v35 = vcombine.high %v4857_v48, %v4845_v4  ;;  %v2504_v39 = vrot.slane %v2490_v62, %v4237_v42  ;;  %v2525_v26 = vcombine.low %v5292_v56, %v5281_v21 }
 0x3c4   : > { %v2684_v58 = vcombine.low %v2628_v12, %v2644_v13  ;;  %v2685_v51 = vcombine.high %v2628_v12, %v2644_v13  ;;  %v2700_v63 = vcombine.low %v5266_v18, %v5270_v6 }
 0x3c5   : > { %v5338_v20 = vrot.slane %v2816_v35, %v4191_v9  ;;  %v2523_v37 = vcombine.low %v2472_v19, %v2504_v39  ;;  %v2506_v35 = vcombine.high %v5232_v55, %v5235_v30 }
 0x3c6   : > { %v5298_v45 = vrot.slane %v2684_v58, %v4237_v42  ;;  %v5301_v5 = vrot.slane %v2700_v63, %v4237_v42  ;;  %v2699_v57 = vrot.slane %v2685_v51, %v4237_v42  ;;  %v2847_v58 = vcombine.low %v5286_v17, %v5289_v54 }
 0x3c7   : > { %v2951_v27 = vpop.permute.xlu1 %2950  ;;  %v2953_v52 = vpop.permute.xlu0 %2952  ;;  %v5335_v63 = vrot.slane %v2800_v36, %v4191_v9  ;;  %v2474_v36 = vcombine.high %v5238_v34, %v5241_v28  ;;  %v2524_v34 = vcombine.high %v2472_v19, %v2504_v39 }
 0x3c8   : > { %v2720_v33 = vcombine.low %v5308_v49, %v5301_v5  ;;  %v2717_v25 = vcombine.high %v5295_v3, %v5298_v45  ;;  %v2970_v4 = vcombine.low %v5276_v43, %v2951_v27  ;;  %v2986_v48 = vcombine.low %v5278_v44, %v2953_v52 }
 0x3c9   : > { %v2718_v62 = vcombine.low %v2667_v7, %v2699_v57  ;;  %v2719_v11 = vcombine.high %v2667_v7, %v2699_v57 }
 0x3ca   : > { %v4036_v12 = vpack.i.bf16 %v2720_v33, %v2525_v26  ;;  %v4011_v13 = vpack.i.bf16 %v2717_v25, %v2522_v32  ;;  %v2864_v26 = vcombine.high %v4876_v0, %v4879_v61  ;;  %v2701_v33 = vcombine.high %v5266_v18, %v5270_v6 }
 0x3cb   : > { %v2955_v59 = vpop.permute.xlu1 %2954  ;;  %v2957_v53 = vpop.permute.xlu0 %2956  ;;  %v2978_v32 = vrot.slane %v2970_v4, %v4191_v9  ;;  %v2994_v25 = vrot.slane %v2986_v48, %v4191_v9  ;;  %v2669_v18 = vcombine.high %v5249_v40, %v5252_v15  ;;  %v2971_v6 = vcombine.high %v5276_v43, %v2951_v27 }
 0x3cc   : > { %4037 = vrot.lane.b32.xlu0 %v4036_v12, %s4112_s12  ;;  %4012 = vrot.lane.b32.xlu1 %v4011_v13, %s4109_s9  ;;  %v4021_v13 = vpack.i.bf16 %v2718_v62, %v2523_v37  ;;  %v2987_v4 = vcombine.high %v5278_v44, %v2953_v52  ;;  %v5358_v55 = vrot.slane %v2701_v33, %v4237_v42 }
 0x3cd   : > { %v3034_v30 = vcombine.low %v2978_v32, %v2994_v25  ;;  %v4031_v43 = vpack.i.bf16 %v2719_v11, %v2524_v34  ;;  %v2721_v44 = vcombine.high %v5308_v49, %v5301_v5  ;;  %v2520_v27 = vrot.slane %v2506_v35, %v4237_v42 }
 0x3ce   : > { %v2683_v48 = vrot.slane %v2669_v18, %v4237_v42  ;;  %v2985_v19 = vrot.slane %v2971_v6, %v4191_v9  ;;  %v2879_v11 = vcombine.low %v5335_v63, %v5338_v20  ;;  %v2488_v5 = vrot.slane %v2474_v36, %v4237_v42 }
 0x3cf   : > { %v2959_v12 = vpop.permute.xlu1 %2958  ;;  %v2961_v14 = vpop.permute.xlu0 %2960  ;;  %v5381_v49 = vrot.slane %v3034_v30, %v4237_v42  ;;  %v2896_v35 = vcombine.high %v4995_v31, %v4984_v38 }
 0x3d0   : > { %v3002_v2 = vcombine.low %v2955_v59, %v2959_v12  ;;  %v3003_v51 = vcombine.high %v2955_v59, %v2959_v12  ;;  %v3018_v0 = vcombine.low %v2957_v53, %v2961_v14  ;;  %v3019_v61 = vcombine.high %v2957_v53, %v2961_v14  ;;  %4022 = vrot.lane.b32.xlu1 %v4021_v13, %s4108_s8 }
 0x3d1   : > { %v3001_v59 = vrot.slane %v2987_v4, %v4191_v9  ;;  %v3035_v53 = vcombine.high %v2978_v32, %v2994_v25  ;;  %v2722_v32 = vcombine.low %v2683_v48, %v5358_v55  ;;  %v2880_v25 = vcombine.high %v5335_v63, %v5338_v20 }
 0x3d2   : > { %v3010_v28 = vrot.slane %v3002_v2, %v4191_v9  ;;  %v3026_v57 = vrot.slane %v3018_v0, %v4191_v9  ;;  %v3017_v14 = vrot.slane %v3003_v51, %v4191_v9  ;;  %v3033_v7 = vrot.slane %v3019_v61, %v4191_v9 }
 0x3d3   : > { %v5364_v40 = vpop.permute.xlu1 %3141  ;;  %v5366_v15 = vpop.permute.xlu0 %3143  ;;  %v2526_v2 = vcombine.high %v5292_v56, %v5281_v21  ;;  %v2878_v12 = vrot.slane %v2864_v26, %v4237_v42  ;;  %v3049_v13 = vrot.slane %v3035_v53, %v4237_v42  ;;  %v3050_v0 = vcombine.low %v2985_v19, %v3001_v59 }
 0x3d4   : > { %v3066_v52 = vcombine.low %v3010_v28, %v3026_v57  ;;  %v3067_v39 = vcombine.high %v3010_v28, %v3026_v57  ;;  %4032 = vrot.lane.b32.xlu1 %v4031_v43, %s4110_s10  ;;  %v3082_v56 = vcombine.low %v3017_v14, %v3033_v7  ;;  %v2527_v61 = vcombine.low %v2488_v5, %v2520_v27 }
 0x3d5   : > { %v4041_v33 = vpack.i.bf16 %v2721_v44, %v2526_v2  ;;  %v3051_v6 = vcombine.high %v2985_v19, %v3001_v59  ;;  %v3083_v4 = vcombine.high %v3017_v14, %v3033_v7  ;;  %v2723_v63 = vcombine.high %v2683_v48, %v5358_v55 }
 0x3d6   : > { %v5384_v62 = vrot.slane %v3066_v52, %v4237_v42  ;;  %v3081_v21 = vrot.slane %v3067_v39, %v4237_v42  ;;  %v2846_v20 = vrot.slane %v2832_v16, %v4237_v42  ;;  %v3090_v26 = vrot.slane %v3082_v56, %v4237_v42 }
 0x3d7   : > { %v5387_v51 = vpop.permute.xlu1 %3145  ;;  %v5389_v37 = vpop.permute.xlu0 %3147  ;;  %v4051_v28 = vpack.i.bf16 %v2722_v32, %v2527_v61  ;;  %v2855_v55 = vrot.slane %v2847_v58, %v4237_v42  ;;  %v2887_v29 = vrot.slane %v2879_v11, %v4237_v42  ;;  %v3058_v24 = vrot.slane %v3050_v0, %v4237_v42 }
 0x3d8   : > { %v3098_v36 = vcombine.low %v5381_v49, %v5384_v62  ;;  %4042 = vrot.lane.b32.xlu1 %v4041_v33, %s4113_s13  ;;  %v3099_v18 = vcombine.high %v5381_v49, %v5384_v62  ;;  %v3100_v43 = vcombine.low %v3049_v13, %v3081_v21  ;;  %v3165_v44 = vcombine.low %v5364_v40, %v5387_v51 }
 0x3d9   : > { %v3181_v14 = vcombine.low %v5366_v15, %v5389_v37  ;;  %v2528_v16 = vcombine.high %v2488_v5, %v2520_v27  ;;  %v2897_v7 = vcombine.low %v2846_v20, %v2878_v12  ;;  %v3065_v52 = vrot.slane %v3051_v6, %v4237_v42 }
 0x3da   : > { %v4046_v57 = vpack.i.bf16 %v3099_v18, %v2896_v35  ;;  %v3097_v39 = vrot.slane %v3083_v4, %v4237_v42  ;;  %v2898_v2 = vcombine.high %v2846_v20, %v2878_v12  ;;  %v2894_v48 = vrot.slane %v2880_v25, %v4237_v42 }
 0x3db   : > { %v3150_v34 = vpop.permute.xlu1 %3149  ;;  %v3152_v30 = vpop.permute.xlu0 %3151  ;;  %v4061_v58 = vpack.i.bf16 %v2723_v63, %v2528_v16  ;;  %v4056_v53 = vpack.i.bf16 %v3100_v43, %v2897_v7  ;;  %v3102_v11 = vcombine.low %v3058_v24, %v3090_v26  ;;  %v3101_v56 = vcombine.high %v3049_v13, %v3081_v21 }
 0x3dc   : > { %4052 = vrot.lane.b32.xlu1 %v4051_v28, %s4111_s11  ;;  %4047 = vrot.lane.b32.xlu0 %v4046_v57, %s4109_s9  ;;  %v3173_v33 = vrot.slane %v3165_v44, %v4191_v9  ;;  %v3189_v32 = vrot.slane %v3181_v14, %v4191_v9  ;;  %v2899_v5 = vcombine.low %v2855_v55, %v2887_v29 }
 0x3dd   : > { %v5640_v25 = vcombine.high %v5286_v17, %v5289_v54  ;;  %v2900_v0 = vcombine.high %v2855_v55, %v2887_v29  ;;  %v3104_v13 = vcombine.low %v3065_v52, %v3097_v39  ;;  %v3103_v18 = vcombine.high %v3058_v24, %v3090_v26  ;;  %v5641_v17 = vld [vmem:[#allocation3_spill] sm:$0xff] }
 0x3de   : > { %v4071_v20 = vpack.i.bf16 %v3102_v11, %v2899_v5  ;;  %v4066_v28 = vpack.i.bf16 %v3101_v56, %v2898_v2  ;;  %v3166_v57 = vcombine.high %v5364_v40, %v5387_v51  ;;  %v3229_v43 = vcombine.low %v3173_v33, %v3189_v32 }
 0x3df   : > { %v3154_v19 = vpop.permute.xlu1 %3153  ;;  %v3156_v59 = vpop.permute.xlu0 %3155  ;;  %v2862_v12 = vrot.slane %v5640_v25, %v4237_v42  ;;  %v3518_v54 = vsel %vm377_vm1, %v5641_v17, %v4695_v23  ;;  %v3182_v55 = vcombine.high %v5366_v15, %v5389_v37  ;;  %v4076_v40 = vpack.i.bf16 %v3103_v18, %v2900_v0  ;;  %v5642_v0 = vld [vmem:[#allocation5_spill] sm:$0xff]  ;;  %v3337_v17 = vld [vmem:[%s5609_s4] sm:$0xff] }
 0x3e0   : > { %v3197_v35 = vcombine.low %v3150_v34, %v3154_v19  ;;  %v3213_v27 = vcombine.low %v3152_v30, %v3156_v59  ;;  %4062 = vrot.lane.b32.xlu1 %v4061_v58, %s4114_s14  ;;  %4057 = vrot.lane.b32.xlu0 %v4056_v53, %s4108_s8  ;;  %v3198_v6 = vcombine.high %v3150_v34, %v3154_v19 }
 0x3e1   : > { %v3214_v4 = vcombine.high %v3152_v30, %v3156_v59  ;;  %v2901_v14 = vcombine.low %v2862_v12, %v2894_v48  ;;  %v3105_v51 = vcombine.high %v3065_v52, %v3097_v39  ;;  %v3180_v15 = vrot.slane %v3166_v57, %v4191_v9 }
 0x3e2   : > { %v3205_v61 = vrot.slane %v3197_v35, %v4191_v9  ;;  %v3221_v21 = vrot.slane %v3213_v27, %v4191_v9  ;;  %v3212_v29 = vrot.slane %v3198_v6, %v4191_v9  ;;  %v5451_v37 = vrot.slane %v3229_v43, %v4237_v42 }
 0x3e3   : > { %v3496_v63 = vpop.permute.xlu0 %3495  ;;  %v3504_v34 = vpop.permute.xlu1 %3503  ;;  %v4081_v30 = vpack.i.bf16 %v3104_v13, %v2901_v14  ;;  %v3228_v24 = vrot.slane %v3214_v4, %v4191_v9  ;;  %v2902_v19 = vcombine.high %v2862_v12, %v2894_v48  ;;  %v3196_v59 = vrot.slane %v3182_v55, %v4191_v9 }
 0x3e4   : > { %v3261_v44 = vcombine.low %v3205_v61, %v3221_v21  ;;  %4072 = vrot.lane.b32.xlu1 %v4071_v20, %s4112_s12  ;;  %4067 = vrot.lane.b32.xlu0 %v4066_v28, %s4110_s10  ;;  %v3262_v16 = vcombine.high %v3205_v61, %v3221_v21  ;;  %v3519_v23 = vsel %vm379_vm2, %v3518_v54, %v3496_v63  ;;  %v5643_v61 = vld [vmem:[#allocation4_spill] sm:$0xff]  ;;  %v5644_v63 = vmov 0.0   ;;  %v5645_v20 = vld [vmem:[#allocation6_spill] sm:$0xff] }
 0x3e5   : > { %v3230_v58 = vcombine.high %v3173_v33, %v3189_v32  ;;  %v3277_v11 = vcombine.low %v3212_v29, %v3228_v24  ;;  %v4086_v56 = vpack.i.bf16 %v3105_v51, %v2902_v19  ;;  %v3245_v33 = vcombine.low %v3180_v15, %v3196_v59 }
 0x3e6   : > { %v5444_v26 = vrot.slane %v3261_v44, %v4237_v42  ;;  %v3276_v53 = vrot.slane %v3262_v16, %v4237_v42  ;;  %v3278_v32 = vcombine.high %v3212_v29, %v3228_v24  ;;  %v3246_v25 = vcombine.high %v3180_v15, %v3196_v59 }
 0x3e7   : > { %v3500_v7 = vpop.permute.xlu0 %3499  ;;  %v3244_v9 = vrot.slane %v3230_v58, %v4237_v42  ;;  %v3285_v35 = vrot.slane %v3277_v11, %v4237_v42  ;;  %v3253_v12 = vrot.slane %v3245_v33, %v4237_v42  ;;  %v3471_v21 = vcombine.high %v5643_v61, %v5642_v0 }
 0x3e8   : > { %v3520_v2 = vsel %vm381_vm3, %v3519_v23, %v3500_v7  ;;  %4082 = vrot.lane.b32.xlu1 %v4081_v30, %s4111_s11  ;;  %4077 = vrot.lane.b32.xlu0 %v4076_v40, %s4113_s13  ;;  %v3293_v39 = vcombine.low %v5451_v37, %v5444_v26  ;;  %v3294_v48 = vcombine.high %v5451_v37, %v5444_v26  ;;  %v5647_v7 = vld [vmem:[#allocation7_spill] sm:$0xff] }
 0x3e9   : > { %v5456_v52 = vsel %vm383_vm4, %v3520_v2, %v3504_v34  ;;  %v3295_v27 = vcombine.low %v3244_v9, %v3276_v53  ;;  %v3296_v5 = vcombine.high %v3244_v9, %v3276_v53  ;;  %v3292_v13 = vrot.slane %v3278_v32, %v4237_v42  ;;  %v3336_v26 = vld [vmem:[%s5608_s3] sm:$0xff] }
 0x3ea   : > { %v3297_v18 = vcombine.low %v3253_v12, %v3285_v35  ;;  %v3298_v6 = vcombine.high %v3253_v12, %v3285_v35  ;;  %v3260_v4 = vrot.slane %v3246_v25, %v4237_v42  ;;  %v3488_v28 = vcombine.high %v5645_v20, %v5644_v63 }
 0x3eb   : > { %v3485_v57 = vrot.slane %v3471_v21, %v4237_v42  ;;  %v3525_v42 = vld [vmem:[%s5611_s6] sm:$0xff]  ;;  %v5646_v16 = vcombine.low %v4885_v10, %v4890_v8  ;;  %v5648_v15 = vcombine.low %v5093_v47, %v5647_v7 }
 0x3ec   : > { %4087 = vrot.lane.b32.xlu0 %v4086_v56, %s4114_s14  ;;  %3302 = vrot.lane.b32.xlu1 %v3294_v48, %s4109_s9  ;;  %v3299_v43 = vcombine.low %v3260_v4, %v3292_v13  ;;  %v3300_v14 = vcombine.high %v3260_v4, %v3292_v13 }
 0x3ed   : > { %v3489_v44 = vcombine.high %v3485_v57, %v5644_v63 }
 0x3f0   : > { %3306 = vrot.lane.b32.xlu0 %v3295_v27, %s4108_s8  ;;  %3310 = vrot.lane.b32.xlu1 %v3296_v5, %s4110_s10 }
 0x3f4   : > { %3314 = vrot.lane.b32.xlu0 %v3297_v18, %s4112_s12  ;;  %3318 = vrot.lane.b32.xlu1 %v3298_v6, %s4113_s13 }
 0x3f8   : > { %3507 = vrot.lane.b32.xlu0 %v3488_v28, %s4113_s13  ;;  %3322 = vrot.lane.b32.xlu1 %v3299_v43, %s4111_s11  ;;  %v5649_v43 = vmov 0.0|0.0  }
 0x3fc   : > { %3326 = vrot.lane.b32.xlu1 %v3300_v14, %s4114_s14  ;;  %3515 = vrot.lane.b32.xlu0 %v3489_v44, %s4114_s14  ;;  %s3672_s14 = sshll.u32 %s5656_s25, 3 }
 0x3fd   : > { %s276_s18 = scalar_lea.vmem %s5612_s7, %s3672_s14 }
 0x400   : > { %3511 = vrot.lane.b32.xlu1 %v3485_v57, %s4111_s11  ;;  %3528 = vperm.xlu0 %4091, %v3525_v42  }
 0x404   : > { %3340 = vperm.xlu1 %3950, %v3337_v17  }
 0x40e   : > { %v3953_v54 = vpop.permute.xlu1 %3952  ;;  %v3958_v55 = vpop.permute.xlu0 %3957 }
 0x40f   : > { %v3955_v30 = vunpack.i.h.bf16 %v3953_v54  ;;  %v3954_v40 = vunpack.i.l.bf16 %v3953_v54  ;;  %v3960_v51 = vunpack.i.h.bf16 %v3958_v55  ;;  %v3959_v29 = vunpack.i.l.bf16 %v3958_v55 }
 0x411   : > { %v1777_v23 = vsel %vm377_vm1, %v5646_v16, %v3954_v40  ;;  %v1980_v2 = vsel %vm377_vm1, %v5648_v15, %v3955_v30  ;;  %v5650_v40 = vcombine.low %v4931_v46, %v4934_v50 }
 0x412   : > { %v3968_v58 = vpop.permute.xlu0 %3967  ;;  %v1981_v53 = vsel %vm379_vm2, %v1980_v2, %v3960_v51  ;;  %v1778_v11 = vsel %vm379_vm2, %v1777_v23, %v3959_v29  ;;  %v5651_v29 = vcombine.low %v5147_v22, %v5150_v60 }
 0x413   : > { %v3963_v34 = vpop.permute.xlu1 %3962  ;;  %v3970_v56 = vunpack.i.h.bf16 %v3968_v58  ;;  %v3969_v48 = vunpack.i.l.bf16 %v3968_v58 }
 0x414   : > { %v3965_v19 = vunpack.i.h.bf16 %v3963_v34  ;;  %v3964_v59 = vunpack.i.l.bf16 %v3963_v34 }
 0x416   : > { %v1779_v33 = vsel %vm381_vm3, %v1778_v11, %v3964_v59  ;;  %v1982_v10 = vsel %vm381_vm3, %v1981_v53, %v3965_v19 }
 0x417   : > { %v3973_v24 = vpop.permute.xlu1 %3972  ;;  %v1780_v27 = vsel %vm383_vm4, %v1779_v33, %v3969_v48  ;;  %v1983_v5 = vsel %vm383_vm4, %v1982_v10, %v3970_v56 }
 0x418   : > { %v3975_v8 = vunpack.i.h.bf16 %v3973_v24  ;;  %v3974_v32 = vunpack.i.l.bf16 %v3973_v24 }
 0x41a   : > { %v1781_v0 = vsel %vm385_vm5, %v1780_v27, %v3974_v32  ;;  %v1984_v61 = vsel %vm385_vm5, %v1983_v5, %v3975_v8 }
 0x41b   : > { %v3983_v9 = vpop.permute.xlu1 %3982 }
 0x41c   : > { %v3985_v35 = vunpack.i.h.bf16 %v3983_v9  ;;  %v3984_v47 = vunpack.i.l.bf16 %v3983_v9 }
 0x41e   : > { %v3978_v12 = vpop.permute.xlu0 %3977  ;;  %v1782_v18 = vsel %vm387_vm6, %v1781_v0, %v3984_v47  ;;  %v1985_v6 = vsel %vm387_vm6, %v1984_v61, %v3985_v35 }
 0x41f   : > { %v3993_v25 = vpop.permute.xlu1 %3992  ;;  %v3980_v14 = vunpack.i.h.bf16 %v3978_v12  ;;  %v3979_v17 = vunpack.i.l.bf16 %v3978_v12 }
 0x420   : > { %v3995_v21 = vunpack.i.h.bf16 %v3993_v25  ;;  %v3994_v13 = vunpack.i.l.bf16 %v3993_v25 }
 0x421   : > { %v2354_v51 = vsel %vm377_vm1, %v5650_v40, %v3980_v14  ;;  %v2175_v24 = vsel %vm377_vm1, %v5651_v29, %v3979_v17 }
 0x422   : > { %v1783_v4 = vsel %vm389_vm7, %v1782_v18, %v3994_v13  ;;  %v1986_v20 = vsel %vm389_vm7, %v1985_v6, %v3995_v21  ;;  %v3988_v28 = vpop.permute.xlu0 %3987 }
 0x423   : > { %v3765_v57 = vpack.c.bf16 %v1986_v20, %v1783_v4  ;;  %v3990_v42 = vunpack.i.h.bf16 %v3988_v28  ;;  %v3989_v54 = vunpack.i.l.bf16 %v3988_v28  ;;  %v4003_v16 = vpop.permute.xlu1 %4002  ;;  %v5652_v28 = vcombine.low %v5213_v41, %v5216_v1 }
 0x424   : > { %v4005_v46 = vunpack.i.h.bf16 %v4003_v16  ;;  %v4004_v50 = vunpack.i.l.bf16 %v4003_v16 }
 0x425   : > { %3766 = vmatpush3.bf16.msra.mxu1 %v3765_v57  ;;  %v2176_v23 = vsel %vm379_vm2, %v2175_v24, %v3989_v54  ;;  %v2355_v7 = vsel %vm379_vm2, %v2354_v51, %v3990_v42 }
 0x426   : > { %3767 = vmatprep.subr.bf16.mxu1 %v5649_v43  ;;  %v3998_v44 = vpop.permute.xlu0 %3997 }
 0x427   : > { %v4000_v34 = vunpack.i.h.bf16 %v3998_v44  ;;  %v3999_v30 = vunpack.i.l.bf16 %v3998_v44  ;;  %v5653_v44 = vcombine.low %v5295_v3, %v5298_v45 }
 0x429   : > { %v2177_v2 = vsel %vm381_vm3, %v2176_v23, %v3999_v30  ;;  %v2356_v19 = vsel %vm381_vm3, %v2355_v7, %v4000_v34 }
 0x42a   : > { %v4008_v55 = vpop.permute.xlu0 %4007  ;;  %v2178_v22 = vsel %vm383_vm4, %v2177_v2, %v4004_v50  ;;  %v2357_v60 = vsel %vm383_vm4, %v2356_v19, %v4005_v46 }
 0x42b   : > { %v4010_v59 = vunpack.i.h.bf16 %v4008_v55  ;;  %v4009_v58 = vunpack.i.l.bf16 %v4008_v55 }
 0x42d   : > { %v2179_v48 = vsel %vm385_vm5, %v2178_v22, %v4009_v58  ;;  %v2358_v9 = vsel %vm385_vm5, %v2357_v60, %v4010_v59 }
 0x42e   : > { %v4018_v15 = vpop.permute.xlu0 %4017 }
 0x42f   : > { %v4020_v53 = vunpack.i.h.bf16 %v4018_v15  ;;  %v4019_v11 = vunpack.i.l.bf16 %v4018_v15 }
 0x431   : > { %v2180_v8 = vsel %vm387_vm6, %v2179_v48, %v4019_v11  ;;  %v2359_v32 = vsel %vm387_vm6, %v2358_v9, %v4020_v53 }
 0x432   : > { %v4028_v56 = vpop.permute.xlu0 %4027 }
 0x433   : > { %v4030_v33 = vunpack.i.h.bf16 %v4028_v56  ;;  %v4029_v10 = vunpack.i.l.bf16 %v4028_v56 }
 0x435   : > { %v2181_v35 = vsel %vm389_vm7, %v2180_v8, %v4029_v10  ;;  %v2360_v47 = vsel %vm389_vm7, %v2359_v32, %v4030_v33  ;;  %v5654_v10 = vcombine.low %v4995_v31, %v4984_v38 }
 0x436   : > { %v3768_v27 = vpack.c.bf16 %v2360_v47, %v2181_v35 }
 0x438   : > { %3769 = vmatpush3.bf16.msra.mxu1 %v3768_v27 }
 0x439   : > { %3770 = vmatprep.subr.bf16.mxu1 %v5649_v43 }
 0x43e   : > { %v4013_v5 = vpop.permute.xlu1 %4012  ;;  %v4038_v18 = vpop.permute.xlu0 %4037 }
 0x43f   : > { %v4015_v0 = vunpack.i.h.bf16 %v4013_v5  ;;  %v4014_v61 = vunpack.i.l.bf16 %v4013_v5  ;;  %v4040_v41 = vunpack.i.h.bf16 %v4038_v18  ;;  %v4039_v1 = vunpack.i.l.bf16 %v4038_v18 }
 0x441   : > { %v2557_v57 = vsel %vm377_vm1, %v5652_v28, %v4014_v61  ;;  %v2752_v14 = vsel %vm377_vm1, %v5653_v44, %v4015_v0 }
 0x442   : > { %v4023_v25 = vpop.permute.xlu1 %4022 }
 0x443   : > { %v4025_v21 = vunpack.i.h.bf16 %v4023_v25  ;;  %v4024_v13 = vunpack.i.l.bf16 %v4023_v25 }
 0x445   : > { %v2558_v17 = vsel %vm379_vm2, %v2557_v57, %v4024_v13  ;;  %v2753_v42 = vsel %vm379_vm2, %v2752_v14, %v4025_v21 }
 0x446   : > { %v4033_v12 = vpop.permute.xlu1 %4032 }
 0x447   : > { %v4035_v6 = vunpack.i.h.bf16 %v4033_v12  ;;  %v4034_v4 = vunpack.i.l.bf16 %v4033_v12 }
 0x449   : > { %v2559_v54 = vsel %vm381_vm3, %v2558_v17, %v4034_v4  ;;  %v2754_v55 = vsel %vm381_vm3, %v2753_v42, %v4035_v6 }
 0x44a   : > { %v4043_v20 = vpop.permute.xlu1 %4042  ;;  %v2560_v3 = vsel %vm383_vm4, %v2559_v54, %v4039_v1  ;;  %v2755_v45 = vsel %vm383_vm4, %v2754_v55, %v4040_v41 }
 0x44b   : > { %v4045_v34 = vunpack.i.h.bf16 %v4043_v20  ;;  %v4044_v30 = vunpack.i.l.bf16 %v4043_v20 }
 0x44d   : > { %v2561_v16 = vsel %vm385_vm5, %v2560_v3, %v4044_v30  ;;  %v2756_v23 = vsel %vm385_vm5, %v2755_v45, %v4045_v34 }
 0x44e   : > { %v4053_v40 = vpop.permute.xlu1 %4052  ;;  %v4048_v51 = vpop.permute.xlu0 %4047 }
 0x44f   : > { %v4055_v29 = vunpack.i.h.bf16 %v4053_v40  ;;  %v4054_v24 = vunpack.i.l.bf16 %v4053_v40  ;;  %v4050_v2 = vunpack.i.h.bf16 %v4048_v51  ;;  %v4049_v19 = vunpack.i.l.bf16 %v4048_v51 }
 0x451   : > { %v2562_v46 = vsel %vm387_vm6, %v2561_v16, %v4054_v24  ;;  %v2757_v50 = vsel %vm387_vm6, %v2756_v23, %v4055_v29  ;;  %v3134_v33 = vsel %vm377_vm1, %v3098_v36, %v4050_v2  ;;  %v2931_v8 = vsel %vm377_vm1, %v5654_v10, %v4049_v19 }
 0x452   : > { %v4063_v7 = vpop.permute.xlu1 %4062  ;;  %v4058_v15 = vpop.permute.xlu0 %4057 }
 0x453   : > { %v4065_v59 = vunpack.i.h.bf16 %v4063_v7  ;;  %v4064_v58 = vunpack.i.l.bf16 %v4063_v7  ;;  %v4060_v53 = vunpack.i.h.bf16 %v4058_v15  ;;  %v4059_v11 = vunpack.i.l.bf16 %v4058_v15  ;;  %v3417_v15 = vld [vmem:[%s5610_s5] sm:$0xff] }
 0x455   : > { %v2563_v22 = vsel %vm389_vm7, %v2562_v46, %v4064_v58  ;;  %v2758_v60 = vsel %vm389_vm7, %v2757_v50, %v4065_v59  ;;  %v2932_v47 = vsel %vm379_vm2, %v2931_v8, %v4059_v11  ;;  %v3135_v27 = vsel %vm379_vm2, %v3134_v33, %v4060_v53 }
 0x456   : > { %v4073_v56 = vpop.permute.xlu1 %4072  ;;  %v4068_v48 = vpop.permute.xlu0 %4067  ;;  %v3771_v9 = vpack.c.bf16 %v2758_v60, %v2563_v22 }
 0x457   : > { %v4070_v32 = vunpack.i.h.bf16 %v4068_v48  ;;  %v4069_v35 = vunpack.i.l.bf16 %v4068_v48  ;;  %v4075_v5 = vunpack.i.h.bf16 %v4073_v56  ;;  %v4074_v25 = vunpack.i.l.bf16 %v4073_v56 }
 0x458   : > { %3772 = vmatpush3.bf16.msra.mxu1 %v3771_v9 }
 0x459   : > { %v2933_v12 = vsel %vm381_vm3, %v2932_v47, %v4069_v35  ;;  %v3136_v49 = vsel %vm381_vm3, %v3135_v27, %v4070_v32  ;;  %3773 = vmatprep.subr.bf16.mxu1 %v5649_v43 }
 0x45a   : > { %v4083_v62 = vpop.permute.xlu1 %4082  ;;  %v4078_v36 = vpop.permute.xlu0 %4077  ;;  %v2934_v21 = vsel %vm383_vm4, %v2933_v12, %v4074_v25  ;;  %v3137_v13 = vsel %vm383_vm4, %v3136_v49, %v4075_v5 }
 0x45b   : > { %v4080_v38 = vunpack.i.h.bf16 %v4078_v36  ;;  %v4079_v31 = vunpack.i.l.bf16 %v4078_v36  ;;  %v4085_v0 = vunpack.i.h.bf16 %v4083_v62  ;;  %v4084_v61 = vunpack.i.l.bf16 %v4083_v62 }
 0x45d   : > { %v2935_v18 = vsel %vm385_vm5, %v2934_v21, %v4079_v31  ;;  %v3138_v6 = vsel %vm385_vm5, %v3137_v13, %v4080_v38 }
 0x45e   : > { %v3303_v4 = vpop.permute.xlu1 %3302  ;;  %v4088_v20 = vpop.permute.xlu0 %4087  ;;  %v2936_v43 = vsel %vm387_vm6, %v2935_v18, %v4084_v61  ;;  %v3139_v44 = vsel %vm387_vm6, %v3138_v6, %v4085_v0 }
 0x45f   : > { %v4090_v28 = vunpack.i.h.bf16 %v4088_v20  ;;  %v4089_v57 = vunpack.i.l.bf16 %v4088_v20  ;;  %v3329_v34 = vsel %vm377_vm1, %v3293_v39, %v3303_v4 }
 0x461   : > { %v2937_v14 = vsel %vm389_vm7, %v2936_v43, %v4089_v57  ;;  %v3140_v17 = vsel %vm389_vm7, %v3139_v44, %v4090_v28 }
 0x462   : > { %v3311_v42 = vpop.permute.xlu1 %3310  ;;  %v3307_v54 = vpop.permute.xlu0 %3306  ;;  %v3774_v55 = vpack.c.bf16 %v3140_v17, %v2937_v14 }
 0x463   : > { %v3330_v30 = vsel %vm379_vm2, %v3329_v34, %v3307_v54 }
 0x464   : > { %3775 = vmatpush3.bf16.msra.mxu1 %v3774_v55  ;;  %v3331_v41 = vsel %vm381_vm3, %v3330_v30, %v3311_v42 }
 0x465   : > { %3748 = vmatprep.subr.mxu1 %v5644_v63 }
 0x466   : > { %v3319_v40 = vpop.permute.xlu1 %3318  ;;  %v3315_v51 = vpop.permute.xlu0 %3314 }
 0x467   : > { %v3332_v1 = vsel %vm383_vm4, %v3331_v41, %v3315_v51 }
 0x468   : > { %v3333_v24 = vsel %vm385_vm5, %v3332_v1, %v3319_v40 }
 0x46a   : > { %v3323_v29 = vpop.permute.xlu1 %3322  ;;  %v3508_v3 = vpop.permute.xlu0 %3507 }
 0x46b   : > { %v3334_v45 = vsel %vm387_vm6, %v3333_v24, %v3323_v29  ;;  %v3522_v63 = vsel %vm385_vm5, %v5456_v52, %v3508_v3 }
 0x46e   : > { %v3327_v16 = vpop.permute.xlu1 %3326  ;;  %v3516_v39 = vpop.permute.xlu0 %3515 }
 0x46f   : > { %v3335_v37 = vsel %vm389_vm7, %v3334_v45, %v3327_v16 }
 0x470   : > { %3749 = vmatpush3.msra.mxu1 %v3335_v37 }
 0x471   : > { %3751 = vmatmul.mubr.msk.f32.vlgmr.msra.gmra.mrb[0].mxu1 %vm3343_vm13, %v3336_v26 }
 0x472   : > { %v3512_v23 = vpop.permute.xlu1 %3511 }
 0x473   : > { %v3523_v7 = vsel %vm387_vm6, %v3522_v63, %v3512_v23 }
 0x474   : > { %v3524_v2 = vsel %vm389_vm7, %v3523_v7, %v3516_v39 }
 0x475   : > { %3754 = vmatpush3.msk.msra.mxu0 %vm1298_vm8, %v3524_v2 }
 0x476   : > { %3756 = vmatmul.mubr.msk.f32.vlgmr.msra.gmra.mrb[2].mxu0 %vm3531_vm14, %v3417_v15 }
 0x47f   : > { %v3529_v58 = vpop.permute.xlu0 %3528 }
 0x483   : > { %v3341_v19 = vpop.permute.xlu1 %3340 }
 0x544   : > { %v3413_v59 = vpop.f32.mrb[0].mxu1 }
 0x545   : > { %v3414_v46 = vadd.f32 %v3413_v59, %v3341_v19  ;;  %v3752_v50 = vpop.f32.mrb[1].mxu1 }
 0x547   : > { %v3777_v53 = vadd.f32 %v3529_v58, %v3414_v46 }
 0x549   : > { %v3604_v52 = vpop.f32.mrb[2].mxu0 }
 0x54a   : > { %v3778_v11 = vadd.f32 %v3777_v53, %v3604_v52  ;;  %v3757_v22 = vpop.f32.mrb[3].mxu0 }
 0x54c   : > { %v3609_v60 = vmax.f32 %v3778_v11, 0.0 }
 0x54e   : > { %3611 = vst.msk [vmem:[%s276_s18] sm:$0xff] %vm3610_vm15, %v3609_v60 }
 0x54f PF: > { %s17_s24 = sadd.s32 1, %s4102_s24  }
 0x550   : > { %p14_p4 = scmp.ge.s32.totalorder %s17_s24, 4  }
 0x552   :  { %16 = sbr.rel (!%p14_p4) target bundleno = 1 (0x1), region = 81 }

</bundles_post_ra>
